<compile_context>
chip_gen: v7x
topology: tpu7x:2x2x1
jax: 0.10.0
libtpu: 0.0.40
codegen_flags: <defaults>
</compile_context>

<pallas_src>
import functools

import numpy as np
import jax
import jax.numpy as jnp
from jax.experimental import pallas as pl
from jax.experimental.pallas import tpu as pltpu

NUM_WORDS_FOR_INPUT = 2
NUM_CLASSES = 81
BN_EPS = 1e-5


# ------------------------------ Pallas kernels ------------------------------ #

def _fused_convs_kernel(p1_ref, w1_ref, g1_ref, be1_ref,
                        w2_ref, g2_ref, be2_ref,
                        w3_ref, g3_ref, be3_ref,
                        o_ref, *, n_batch, spatial, khs):
    """Three fused (conv -> BatchNorm(batch stats) -> ReLU) layers.

    Activations live in VMEM as (C, M), M = N*Ho*Wo on the 128-lane axis.
    p1_ref is the (K1, M1) im2col of the 1-channel input (built on the host);
    layers 2/3 (kw == 1) build their im2col patches in-kernel from the
    VMEM-resident bf16 activation via static slices.
    """
    (ho1, wo1), (ho2, wo2), (ho3, wo3) = spatial
    kh2, kh3 = khs

    def bn_relu(y, g, be):
        # One-pass batch statistics over (N, H, W) == the lane axis of y,
        # then a single fused scale/shift:  max(y*scale + shift, 0).
        inv_m = 1.0 / y.shape[1]
        mean = jnp.sum(y, axis=1, keepdims=True) * inv_m
        var = jnp.sum(y * y, axis=1, keepdims=True) * inv_m - mean * mean
        scale = g * jax.lax.rsqrt(var + BN_EPS)
        shift = be - mean * scale
        return jnp.maximum(y * scale + shift, 0.0)

    def im2col(act, ho, wo, hn, kh):
        # act: (C, n_batch*ho*wo) bf16; conv kernel (kh, 1), stride 1, valid.
        # Row order (dh, c); column order (n, h, w) -- matches prep_w / m index.
        blocks = []
        for dh in range(kh):
            per_n = [act[:, n * ho * wo + dh * wo:
                            n * ho * wo + dh * wo + hn * wo]
                     for n in range(n_batch)]
            blocks.append(per_n[0] if n_batch == 1
                          else jnp.concatenate(per_n, axis=1))
        return jnp.concatenate(blocks, axis=0)        # (kh*C, n_batch*hn*wo)

    # layer 1 (patches precomputed on host, Cin == 1)
    y1 = jnp.dot(w1_ref[...], p1_ref[...], preferred_element_type=jnp.float32)
    a1 = bn_relu(y1, g1_ref[...], be1_ref[...]).astype(jnp.bfloat16)

    # layer 2
    p2 = im2col(a1, ho1, wo1, ho2, kh2)
    y2 = jnp.dot(w2_ref[...], p2, preferred_element_type=jnp.float32)
    a2 = bn_relu(y2, g2_ref[...], be2_ref[...]).astype(jnp.bfloat16)

    # layer 3
    p3 = im2col(a2, ho2, wo2, ho3, kh3)
    y3 = jnp.dot(w3_ref[...], p3, preferred_element_type=jnp.float32)
    o_ref[...] = bn_relu(y3, g3_ref[...], be3_ref[...]).astype(o_ref.dtype)


def _head_kernel(x_ref, w1_ref, b1_ref, w2_ref, b2_ref, o_ref):
    # fc1 -> fc2 -> softmax(dim=1); bf16 matmul operands, f32 accumulation.
    h = jnp.dot(x_ref[...], w1_ref[...],
                preferred_element_type=jnp.float32) + b1_ref[...]
    logits = jnp.dot(h.astype(jnp.bfloat16), w2_ref[...],
                     preferred_element_type=jnp.float32) + b2_ref[...]
    m = jnp.max(logits, axis=1, keepdims=True)
    e = jnp.exp(logits - m)
    denom = jnp.sum(e, axis=1, keepdims=True)
    o_ref[...] = e * pl.reciprocal(denom, approx=True)


def _vmem_specs(n):
    return [pl.BlockSpec(memory_space=pltpu.MemorySpace.VMEM) for _ in range(n)]


# ------------------------------ wrappers (glue) ------------------------------ #

def convnet_forward(x, p):
    """Full forward pass with 2 pallas_calls: fused convs + head."""
    N, _, H, W = x.shape
    kh1, kw1 = 10, NUM_WORDS_FOR_INPUT
    ho1, wo1 = H - kh1 + 1, W - kw1 + 1
    kh2 = kh3 = 10
    ho2, wo2 = ho1 - kh2 + 1, wo1
    ho3, wo3 = ho2 - kh3 + 1, wo2
    c3 = p["w3c"].shape[0]

    # layer-1 im2col on the host (Cin == 1, tiny).  Rows ordered (dh, dw),
    # columns m = n*ho1*wo1 + h*wo1 + w.
    rows = []
    for dh in range(kh1):
        for dw in range(kw1):
            rows.append(x[:, 0, dh:dh + ho1, dw:dw + wo1].reshape(N * ho1 * wo1))
    p1 = jnp.stack(rows, axis=0).astype(jnp.bfloat16)           # (kh1*kw1, M1)

    def prep_w(w):   # (Cout,Cin,kh,kw) -> (Cout, kh*kw*Cin), rows (dh, dw, cin)
        return w.transpose(0, 2, 3, 1).reshape(w.shape[0], -1).astype(jnp.bfloat16)

    def col(v):      # BN param -> (C, 1) so it broadcasts over the lane (M) axis
        return v.reshape(-1, 1)

    kern = functools.partial(
        _fused_convs_kernel, n_batch=N,
        spatial=((ho1, wo1), (ho2, wo2), (ho3, wo3)), khs=(kh2, kh3))

    a3 = pl.pallas_call(
        kern,
        out_shape=jax.ShapeDtypeStruct((c3, N * ho3 * wo3), jnp.bfloat16),
        in_specs=_vmem_specs(10),
        out_specs=pl.BlockSpec(memory_space=pltpu.MemorySpace.VMEM),
    )(p1,
      prep_w(p["w1c"]), col(p["g1"]), col(p["be1"]),
      prep_w(p["w2c"]), col(p["g2"]), col(p["be2"]),
      prep_w(p["w3c"]), col(p["g3"]), col(p["be3"]))

    # flatten to PyTorch's view(-1, C*H*W) order (c, h, w) per sample: a tiny
    # bf16 relayout in XLA; the head's fc1 weight stream dominates HBM traffic.
    feat = a3.reshape(c3, N, ho3 * wo3).transpose(1, 0, 2).reshape(N, -1)

    return pl.pallas_call(
        _head_kernel,
        out_shape=jax.ShapeDtypeStruct((N, p["fc2_w"].shape[1]), jnp.float32),
        in_specs=_vmem_specs(5),
        out_specs=pl.BlockSpec(memory_space=pltpu.MemorySpace.VMEM),
    )(feat,
      p["fc1_w"].astype(jnp.bfloat16), p["fc1_b"].reshape(1, -1),
      p["fc2_w"].astype(jnp.bfloat16), p["fc2_b"].reshape(1, -1))


# ------------------------------ reference (plain JAX) ------------------------ #

def reference_forward(x, p):
    bf16, f32 = jnp.bfloat16, jnp.float32

    def layer(x, w, b, g, be):
        y = jax.lax.conv_general_dilated(
            x.astype(bf16), w.astype(bf16), (1, 1), "VALID",
            dimension_numbers=("NCHW", "OIHW", "NCHW"),
            preferred_element_type=f32)
        y = y + b[None, :, None, None]     # conv bias (cancelled by BN mean)
        mean = jnp.mean(y, axis=(0, 2, 3), keepdims=True)
        var = jnp.mean((y - mean) ** 2, axis=(0, 2, 3), keepdims=True)
        y = (y - mean) * jax.lax.rsqrt(var + BN_EPS)
        y = y * g[None, :, None, None] + be[None, :, None, None]
        return jnp.maximum(y, 0.0)

    out = layer(x, p["w1c"], p["b1c"], p["g1"], p["be1"])
    out = layer(out, p["w2c"], p["b2c"], p["g2"], p["be2"])
    out = layer(out, p["w3c"], p["b3c"], p["g3"], p["be3"])
    out = out.reshape(out.shape[0], -1)
    h = jnp.dot(out.astype(bf16), p["fc1_w"].astype(bf16),
                preferred_element_type=f32) + p["fc1_b"]
    logits = jnp.dot(h.astype(bf16), p["fc2_w"].astype(bf16),
                     preferred_element_type=f32) + p["fc2_b"]
    return jax.nn.softmax(logits, axis=1)


# ------------------------------ param init ----------------------------------- #

def init_params(key, flat_dim):
    ks = jax.random.split(key, 16)

    def conv_init(kw_, kb_, cout, cin, kh, kw):
        fan = cin * kh * kw
        w = jax.random.normal(kw_, (cout, cin, kh, kw), jnp.float32) / np.sqrt(fan)
        b = jax.random.normal(kb_, (cout,), jnp.float32) * 0.01
        return w, b

    def lin_init(kw_, kb_, din, dout):
        w = jax.random.normal(kw_, (din, dout), jnp.float32) / np.sqrt(din)
        b = jax.random.normal(kb_, (dout,), jnp.float32) * 0.01
        return w, b

    def bn_init(kg, kb, c):
        g = 1.0 + 0.1 * jax.random.normal(kg, (c,), jnp.float32)
        be = 0.1 * jax.random.normal(kb, (c,), jnp.float32)
        return g, be

    p = {}
    p["w1c"], p["b1c"] = conv_init(ks[0], ks[1], 16, 1, 10, NUM_WORDS_FOR_INPUT)
    p["g1"], p["be1"] = bn_init(ks[2], ks[3], 16)
    p["w2c"], p["b2c"] = conv_init(ks[4], ks[5], 32, 16, 10, 1)
    p["g2"], p["be2"] = bn_init(ks[6], ks[7], 32)
    p["w3c"], p["b3c"] = conv_init(ks[8], ks[9], 32, 32, 10, 1)
    p["g3"], p["be3"] = bn_init(ks[10], ks[11], 32)
    p["fc1_w"], p["fc1_b"] = lin_init(ks[12], ks[13], flat_dim, 40)
    p["fc2_w"], p["fc2_b"] = lin_init(ks[14], ks[15], 40, NUM_CLASSES)
    return p


# ------------------------------ main ------------------------------------------ #

if __name__ == "__main__":
    key = jax.random.PRNGKey(0)
    k_x, k_p = jax.random.split(key)

    # Scaled-down input (original module implies (N, 1, 300, 45)).
    N, H, W = 2, 43, 3
    x = jax.random.normal(k_x, (N, 1, H, W), jnp.float32)

    # After 3 valid convs: H -> H-27 = 16, W -> W-1 = 2, C = 32 -> flat 1024.
    flat_dim = 32 * (H - 27) * (W - 1)
    params = init_params(k_p, flat_dim)

    out = jax.block_until_ready(jax.jit(convnet_forward)(x, params))
    ref = jax.block_until_ready(jax.jit(reference_forward)(x, params))

    out_np, ref_np = np.asarray(out), np.asarray(ref)
    assert out_np.shape == (N, NUM_CLASSES), out_np.shape
    # approx reciprocal in the softmax -> slightly looser sum-to-1 check
    assert np.allclose(out_np.sum(axis=1), 1.0, atol=5e-3)
    # bf16 matmuls in both paths; differences are reduction-order / approx-rcp only
    assert np.allclose(out_np, ref_np, rtol=2e-2, atol=1e-3), (
        float(np.max(np.abs(out_np - ref_np))))

    print("KERNEL_OK")
</pallas_src>

<mosaic_0001>
module attributes {stable_mosaic.version = 11 : i64} {
  func.func @_fused_convs_kernel(%arg0: memref<20x136xbf16, #tpu.memory_space<vmem>>, %arg1: memref<16x20xbf16, #tpu.memory_space<vmem>>, %arg2: memref<16x1xf32, #tpu.memory_space<vmem>>, %arg3: memref<16x1xf32, #tpu.memory_space<vmem>>, %arg4: memref<32x160xbf16, #tpu.memory_space<vmem>>, %arg5: memref<32x1xf32, #tpu.memory_space<vmem>>, %arg6: memref<32x1xf32, #tpu.memory_space<vmem>>, %arg7: memref<32x320xbf16, #tpu.memory_space<vmem>>, %arg8: memref<32x1xf32, #tpu.memory_space<vmem>>, %arg9: memref<32x1xf32, #tpu.memory_space<vmem>>, %arg10: memref<32x64xbf16, #tpu.memory_space<vmem>>) attributes {dimension_semantics = [], scalar_prefetch = 0 : i64, scratch_operands = 0 : i64, tpu.core_type = #tpu.core_type<tc>} {
    %c0 = arith.constant 0 : index
    %c0_0 = arith.constant 0 : index
    %0 = vector.load %arg1[%c0, %c0_0] : memref<16x20xbf16, #tpu.memory_space<vmem>>, vector<16x20xbf16>
    %c0_1 = arith.constant 0 : index
    %c0_2 = arith.constant 0 : index
    %1 = vector.load %arg0[%c0_1, %c0_2] : memref<20x136xbf16, #tpu.memory_space<vmem>>, vector<20x136xbf16>
    %cst = arith.constant dense<0.000000e+00> : vector<16x136xf32>
    %2 = tpu.matmul %0, %1, %cst {dimension_numbers = #tpu.dot_dimension_numbers<[1], [0], [0], [1], [0, 0, 1, 1], [], []>} : vector<16x20xbf16>, vector<20x136xbf16>, vector<16x136xf32> -> vector<16x136xf32>
    %c0_3 = arith.constant 0 : index
    %c0_4 = arith.constant 0 : index
    %3 = vector.load %arg2[%c0_3, %c0_4] : memref<16x1xf32, #tpu.memory_space<vmem>>, vector<16x1xf32>
    %c0_5 = arith.constant 0 : index
    %c0_6 = arith.constant 0 : index
    %4 = vector.load %arg3[%c0_5, %c0_6] : memref<16x1xf32, #tpu.memory_space<vmem>>, vector<16x1xf32>
    %cst_7 = arith.constant dense<0.000000e+00> : vector<16xf32>
    %5 = vector.multi_reduction <add>, %2, %cst_7 [1] : vector<16x136xf32> to vector<16xf32>
    %6 = vector.shape_cast %5 : vector<16xf32> to vector<16x1xf32>
    %cst_8 = arith.constant 0.0073529412 : f32
    %7 = vector.broadcast %cst_8 : f32 to vector<16x1xf32>
    %8 = arith.mulf %6, %7 : vector<16x1xf32>
    %9 = arith.mulf %2, %2 : vector<16x136xf32>
    %cst_9 = arith.constant dense<0.000000e+00> : vector<16xf32>
    %10 = vector.multi_reduction <add>, %9, %cst_9 [1] : vector<16x136xf32> to vector<16xf32>
    %11 = vector.shape_cast %10 : vector<16xf32> to vector<16x1xf32>
    %cst_10 = arith.constant 0.0073529412 : f32
    %12 = vector.broadcast %cst_10 : f32 to vector<16x1xf32>
    %13 = arith.mulf %11, %12 : vector<16x1xf32>
    %14 = arith.mulf %8, %8 : vector<16x1xf32>
    %15 = arith.subf %13, %14 : vector<16x1xf32>
    %cst_11 = arith.constant 9.99999974E-6 : f32
    %16 = vector.broadcast %cst_11 : f32 to vector<16x1xf32>
    %17 = arith.addf %15, %16 : vector<16x1xf32>
    %18 = math.rsqrt %17 : vector<16x1xf32>
    %19 = arith.mulf %3, %18 : vector<16x1xf32>
    %20 = arith.mulf %8, %19 : vector<16x1xf32>
    %21 = arith.subf %4, %20 : vector<16x1xf32>
    %22 = vector.broadcast %19 : vector<16x1xf32> to vector<16x136xf32>
    %23 = arith.mulf %2, %22 : vector<16x136xf32>
    %24 = vector.broadcast %21 : vector<16x1xf32> to vector<16x136xf32>
    %25 = arith.addf %23, %24 : vector<16x136xf32>
    %cst_12 = arith.constant 0.000000e+00 : f32
    %26 = vector.broadcast %cst_12 : f32 to vector<16x136xf32>
    %27 = arith.maximumf %25, %26 : vector<16x136xf32>
    %28 = arith.truncf %27 : vector<16x136xf32> to vector<16x136xbf16>
    %29 = vector.extract_strided_slice %28 {offsets = [0, 0], sizes = [16, 50], strides = [1, 1]} : vector<16x136xbf16> to vector<16x50xbf16>
    %30 = vector.extract_strided_slice %28 {offsets = [0, 68], sizes = [16, 50], strides = [1, 1]} : vector<16x136xbf16> to vector<16x50xbf16>
    %31 = tpu.concatenate %29, %30 in 1 : vector<16x50xbf16>, vector<16x50xbf16> -> vector<16x100xbf16>
    %32 = vector.extract_strided_slice %28 {offsets = [0, 2], sizes = [16, 50], strides = [1, 1]} : vector<16x136xbf16> to vector<16x50xbf16>
    %33 = vector.extract_strided_slice %28 {offsets = [0, 70], sizes = [16, 50], strides = [1, 1]} : vector<16x136xbf16> to vector<16x50xbf16>
    %34 = tpu.concatenate %32, %33 in 1 : vector<16x50xbf16>, vector<16x50xbf16> -> vector<16x100xbf16>
    %35 = vector.extract_strided_slice %28 {offsets = [0, 4], sizes = [16, 50], strides = [1, 1]} : vector<16x136xbf16> to vector<16x50xbf16>
    %36 = vector.extract_strided_slice %28 {offsets = [0, 72], sizes = [16, 50], strides = [1, 1]} : vector<16x136xbf16> to vector<16x50xbf16>
    %37 = tpu.concatenate %35, %36 in 1 : vector<16x50xbf16>, vector<16x50xbf16> -> vector<16x100xbf16>
    %38 = vector.extract_strided_slice %28 {offsets = [0, 6], sizes = [16, 50], strides = [1, 1]} : vector<16x136xbf16> to vector<16x50xbf16>
    %39 = vector.extract_strided_slice %28 {offsets = [0, 74], sizes = [16, 50], strides = [1, 1]} : vector<16x136xbf16> to vector<16x50xbf16>
    %40 = tpu.concatenate %38, %39 in 1 : vector<16x50xbf16>, vector<16x50xbf16> -> vector<16x100xbf16>
    %41 = vector.extract_strided_slice %28 {offsets = [0, 8], sizes = [16, 50], strides = [1, 1]} : vector<16x136xbf16> to vector<16x50xbf16>
    %42 = vector.extract_strided_slice %28 {offsets = [0, 76], sizes = [16, 50], strides = [1, 1]} : vector<16x136xbf16> to vector<16x50xbf16>
    %43 = tpu.concatenate %41, %42 in 1 : vector<16x50xbf16>, vector<16x50xbf16> -> vector<16x100xbf16>
    %44 = vector.extract_strided_slice %28 {offsets = [0, 10], sizes = [16, 50], strides = [1, 1]} : vector<16x136xbf16> to vector<16x50xbf16>
    %45 = vector.extract_strided_slice %28 {offsets = [0, 78], sizes = [16, 50], strides = [1, 1]} : vector<16x136xbf16> to vector<16x50xbf16>
    %46 = tpu.concatenate %44, %45 in 1 : vector<16x50xbf16>, vector<16x50xbf16> -> vector<16x100xbf16>
    %47 = vector.extract_strided_slice %28 {offsets = [0, 12], sizes = [16, 50], strides = [1, 1]} : vector<16x136xbf16> to vector<16x50xbf16>
    %48 = vector.extract_strided_slice %28 {offsets = [0, 80], sizes = [16, 50], strides = [1, 1]} : vector<16x136xbf16> to vector<16x50xbf16>
    %49 = tpu.concatenate %47, %48 in 1 : vector<16x50xbf16>, vector<16x50xbf16> -> vector<16x100xbf16>
    %50 = vector.extract_strided_slice %28 {offsets = [0, 14], sizes = [16, 50], strides = [1, 1]} : vector<16x136xbf16> to vector<16x50xbf16>
    %51 = vector.extract_strided_slice %28 {offsets = [0, 82], sizes = [16, 50], strides = [1, 1]} : vector<16x136xbf16> to vector<16x50xbf16>
    %52 = tpu.concatenate %50, %51 in 1 : vector<16x50xbf16>, vector<16x50xbf16> -> vector<16x100xbf16>
    %53 = vector.extract_strided_slice %28 {offsets = [0, 16], sizes = [16, 50], strides = [1, 1]} : vector<16x136xbf16> to vector<16x50xbf16>
    %54 = vector.extract_strided_slice %28 {offsets = [0, 84], sizes = [16, 50], strides = [1, 1]} : vector<16x136xbf16> to vector<16x50xbf16>
    %55 = tpu.concatenate %53, %54 in 1 : vector<16x50xbf16>, vector<16x50xbf16> -> vector<16x100xbf16>
    %56 = vector.extract_strided_slice %28 {offsets = [0, 18], sizes = [16, 50], strides = [1, 1]} : vector<16x136xbf16> to vector<16x50xbf16>
    %57 = vector.extract_strided_slice %28 {offsets = [0, 86], sizes = [16, 50], strides = [1, 1]} : vector<16x136xbf16> to vector<16x50xbf16>
    %58 = tpu.concatenate %56, %57 in 1 : vector<16x50xbf16>, vector<16x50xbf16> -> vector<16x100xbf16>
    %59 = tpu.concatenate %31, %34, %37, %40, %43, %46, %49, %52, %55, %58 in 0 : vector<16x100xbf16>, vector<16x100xbf16>, vector<16x100xbf16>, vector<16x100xbf16>, vector<16x100xbf16>, vector<16x100xbf16>, vector<16x100xbf16>, vector<16x100xbf16>, vector<16x100xbf16>, vector<16x100xbf16> -> vector<160x100xbf16>
    %c0_13 = arith.constant 0 : index
    %c0_14 = arith.constant 0 : index
    %60 = vector.load %arg4[%c0_13, %c0_14] : memref<32x160xbf16, #tpu.memory_space<vmem>>, vector<32x160xbf16>
    %cst_15 = arith.constant dense<0.000000e+00> : vector<32x100xf32>
    %61 = tpu.matmul %60, %59, %cst_15 {dimension_numbers = #tpu.dot_dimension_numbers<[1], [0], [0], [1], [0, 0, 1, 1], [], []>} : vector<32x160xbf16>, vector<160x100xbf16>, vector<32x100xf32> -> vector<32x100xf32>
    %c0_16 = arith.constant 0 : index
    %c0_17 = arith.constant 0 : index
    %62 = vector.load %arg5[%c0_16, %c0_17] : memref<32x1xf32, #tpu.memory_space<vmem>>, vector<32x1xf32>
    %c0_18 = arith.constant 0 : index
    %c0_19 = arith.constant 0 : index
    %63 = vector.load %arg6[%c0_18, %c0_19] : memref<32x1xf32, #tpu.memory_space<vmem>>, vector<32x1xf32>
    %cst_20 = arith.constant dense<0.000000e+00> : vector<32xf32>
    %64 = vector.multi_reduction <add>, %61, %cst_20 [1] : vector<32x100xf32> to vector<32xf32>
    %65 = vector.shape_cast %64 : vector<32xf32> to vector<32x1xf32>
    %cst_21 = arith.constant 0.00999999977 : f32
    %66 = vector.broadcast %cst_21 : f32 to vector<32x1xf32>
    %67 = arith.mulf %65, %66 : vector<32x1xf32>
    %68 = arith.mulf %61, %61 : vector<32x100xf32>
    %cst_22 = arith.constant dense<0.000000e+00> : vector<32xf32>
    %69 = vector.multi_reduction <add>, %68, %cst_22 [1] : vector<32x100xf32> to vector<32xf32>
    %70 = vector.shape_cast %69 : vector<32xf32> to vector<32x1xf32>
    %cst_23 = arith.constant 0.00999999977 : f32
    %71 = vector.broadcast %cst_23 : f32 to vector<32x1xf32>
    %72 = arith.mulf %70, %71 : vector<32x1xf32>
    %73 = arith.mulf %67, %67 : vector<32x1xf32>
    %74 = arith.subf %72, %73 : vector<32x1xf32>
    %cst_24 = arith.constant 9.99999974E-6 : f32
    %75 = vector.broadcast %cst_24 : f32 to vector<32x1xf32>
    %76 = arith.addf %74, %75 : vector<32x1xf32>
    %77 = math.rsqrt %76 : vector<32x1xf32>
    %78 = arith.mulf %62, %77 : vector<32x1xf32>
    %79 = arith.mulf %67, %78 : vector<32x1xf32>
    %80 = arith.subf %63, %79 : vector<32x1xf32>
    %81 = vector.broadcast %78 : vector<32x1xf32> to vector<32x100xf32>
    %82 = arith.mulf %61, %81 : vector<32x100xf32>
    %83 = vector.broadcast %80 : vector<32x1xf32> to vector<32x100xf32>
    %84 = arith.addf %82, %83 : vector<32x100xf32>
    %cst_25 = arith.constant 0.000000e+00 : f32
    %85 = vector.broadcast %cst_25 : f32 to vector<32x100xf32>
    %86 = arith.maximumf %84, %85 : vector<32x100xf32>
    %87 = arith.truncf %86 : vector<32x100xf32> to vector<32x100xbf16>
    %88 = vector.extract_strided_slice %87 {offsets = [0, 0], sizes = [32, 32], strides = [1, 1]} : vector<32x100xbf16> to vector<32x32xbf16>
    %89 = vector.extract_strided_slice %87 {offsets = [0, 50], sizes = [32, 32], strides = [1, 1]} : vector<32x100xbf16> to vector<32x32xbf16>
    %90 = tpu.concatenate %88, %89 in 1 : vector<32x32xbf16>, vector<32x32xbf16> -> vector<32x64xbf16>
    %91 = vector.extract_strided_slice %87 {offsets = [0, 2], sizes = [32, 32], strides = [1, 1]} : vector<32x100xbf16> to vector<32x32xbf16>
    %92 = vector.extract_strided_slice %87 {offsets = [0, 52], sizes = [32, 32], strides = [1, 1]} : vector<32x100xbf16> to vector<32x32xbf16>
    %93 = tpu.concatenate %91, %92 in 1 : vector<32x32xbf16>, vector<32x32xbf16> -> vector<32x64xbf16>
    %94 = vector.extract_strided_slice %87 {offsets = [0, 4], sizes = [32, 32], strides = [1, 1]} : vector<32x100xbf16> to vector<32x32xbf16>
    %95 = vector.extract_strided_slice %87 {offsets = [0, 54], sizes = [32, 32], strides = [1, 1]} : vector<32x100xbf16> to vector<32x32xbf16>
    %96 = tpu.concatenate %94, %95 in 1 : vector<32x32xbf16>, vector<32x32xbf16> -> vector<32x64xbf16>
    %97 = vector.extract_strided_slice %87 {offsets = [0, 6], sizes = [32, 32], strides = [1, 1]} : vector<32x100xbf16> to vector<32x32xbf16>
    %98 = vector.extract_strided_slice %87 {offsets = [0, 56], sizes = [32, 32], strides = [1, 1]} : vector<32x100xbf16> to vector<32x32xbf16>
    %99 = tpu.concatenate %97, %98 in 1 : vector<32x32xbf16>, vector<32x32xbf16> -> vector<32x64xbf16>
    %100 = vector.extract_strided_slice %87 {offsets = [0, 8], sizes = [32, 32], strides = [1, 1]} : vector<32x100xbf16> to vector<32x32xbf16>
    %101 = vector.extract_strided_slice %87 {offsets = [0, 58], sizes = [32, 32], strides = [1, 1]} : vector<32x100xbf16> to vector<32x32xbf16>
    %102 = tpu.concatenate %100, %101 in 1 : vector<32x32xbf16>, vector<32x32xbf16> -> vector<32x64xbf16>
    %103 = vector.extract_strided_slice %87 {offsets = [0, 10], sizes = [32, 32], strides = [1, 1]} : vector<32x100xbf16> to vector<32x32xbf16>
    %104 = vector.extract_strided_slice %87 {offsets = [0, 60], sizes = [32, 32], strides = [1, 1]} : vector<32x100xbf16> to vector<32x32xbf16>
    %105 = tpu.concatenate %103, %104 in 1 : vector<32x32xbf16>, vector<32x32xbf16> -> vector<32x64xbf16>
    %106 = vector.extract_strided_slice %87 {offsets = [0, 12], sizes = [32, 32], strides = [1, 1]} : vector<32x100xbf16> to vector<32x32xbf16>
    %107 = vector.extract_strided_slice %87 {offsets = [0, 62], sizes = [32, 32], strides = [1, 1]} : vector<32x100xbf16> to vector<32x32xbf16>
    %108 = tpu.concatenate %106, %107 in 1 : vector<32x32xbf16>, vector<32x32xbf16> -> vector<32x64xbf16>
    %109 = vector.extract_strided_slice %87 {offsets = [0, 14], sizes = [32, 32], strides = [1, 1]} : vector<32x100xbf16> to vector<32x32xbf16>
    %110 = vector.extract_strided_slice %87 {offsets = [0, 64], sizes = [32, 32], strides = [1, 1]} : vector<32x100xbf16> to vector<32x32xbf16>
    %111 = tpu.concatenate %109, %110 in 1 : vector<32x32xbf16>, vector<32x32xbf16> -> vector<32x64xbf16>
    %112 = vector.extract_strided_slice %87 {offsets = [0, 16], sizes = [32, 32], strides = [1, 1]} : vector<32x100xbf16> to vector<32x32xbf16>
    %113 = vector.extract_strided_slice %87 {offsets = [0, 66], sizes = [32, 32], strides = [1, 1]} : vector<32x100xbf16> to vector<32x32xbf16>
    %114 = tpu.concatenate %112, %113 in 1 : vector<32x32xbf16>, vector<32x32xbf16> -> vector<32x64xbf16>
    %115 = vector.extract_strided_slice %87 {offsets = [0, 18], sizes = [32, 32], strides = [1, 1]} : vector<32x100xbf16> to vector<32x32xbf16>
    %116 = vector.extract_strided_slice %87 {offsets = [0, 68], sizes = [32, 32], strides = [1, 1]} : vector<32x100xbf16> to vector<32x32xbf16>
    %117 = tpu.concatenate %115, %116 in 1 : vector<32x32xbf16>, vector<32x32xbf16> -> vector<32x64xbf16>
    %118 = tpu.concatenate %90, %93, %96, %99, %102, %105, %108, %111, %114, %117 in 0 : vector<32x64xbf16>, vector<32x64xbf16>, vector<32x64xbf16>, vector<32x64xbf16>, vector<32x64xbf16>, vector<32x64xbf16>, vector<32x64xbf16>, vector<32x64xbf16>, vector<32x64xbf16>, vector<32x64xbf16> -> vector<320x64xbf16>
    %c0_26 = arith.constant 0 : index
    %c0_27 = arith.constant 0 : index
    %119 = vector.load %arg7[%c0_26, %c0_27] : memref<32x320xbf16, #tpu.memory_space<vmem>>, vector<32x320xbf16>
    %cst_28 = arith.constant dense<0.000000e+00> : vector<32x64xf32>
    %120 = tpu.matmul %119, %118, %cst_28 {dimension_numbers = #tpu.dot_dimension_numbers<[1], [0], [0], [1], [0, 0, 1, 1], [], []>} : vector<32x320xbf16>, vector<320x64xbf16>, vector<32x64xf32> -> vector<32x64xf32>
    %c0_29 = arith.constant 0 : index
    %c0_30 = arith.constant 0 : index
    %121 = vector.load %arg8[%c0_29, %c0_30] : memref<32x1xf32, #tpu.memory_space<vmem>>, vector<32x1xf32>
    %c0_31 = arith.constant 0 : index
    %c0_32 = arith.constant 0 : index
    %122 = vector.load %arg9[%c0_31, %c0_32] : memref<32x1xf32, #tpu.memory_space<vmem>>, vector<32x1xf32>
    %cst_33 = arith.constant dense<0.000000e+00> : vector<32xf32>
    %123 = vector.multi_reduction <add>, %120, %cst_33 [1] : vector<32x64xf32> to vector<32xf32>
    %124 = vector.shape_cast %123 : vector<32xf32> to vector<32x1xf32>
    %cst_34 = arith.constant 1.562500e-02 : f32
    %125 = vector.broadcast %cst_34 : f32 to vector<32x1xf32>
    %126 = arith.mulf %124, %125 : vector<32x1xf32>
    %127 = arith.mulf %120, %120 : vector<32x64xf32>
    %cst_35 = arith.constant dense<0.000000e+00> : vector<32xf32>
    %128 = vector.multi_reduction <add>, %127, %cst_35 [1] : vector<32x64xf32> to vector<32xf32>
    %129 = vector.shape_cast %128 : vector<32xf32> to vector<32x1xf32>
    %cst_36 = arith.constant 1.562500e-02 : f32
    %130 = vector.broadcast %cst_36 : f32 to vector<32x1xf32>
    %131 = arith.mulf %129, %130 : vector<32x1xf32>
    %132 = arith.mulf %126, %126 : vector<32x1xf32>
    %133 = arith.subf %131, %132 : vector<32x1xf32>
    %cst_37 = arith.constant 9.99999974E-6 : f32
    %134 = vector.broadcast %cst_37 : f32 to vector<32x1xf32>
    %135 = arith.addf %133, %134 : vector<32x1xf32>
    %136 = math.rsqrt %135 : vector<32x1xf32>
    %137 = arith.mulf %121, %136 : vector<32x1xf32>
    %138 = arith.mulf %126, %137 : vector<32x1xf32>
    %139 = arith.subf %122, %138 : vector<32x1xf32>
    %140 = vector.broadcast %137 : vector<32x1xf32> to vector<32x64xf32>
    %141 = arith.mulf %120, %140 : vector<32x64xf32>
    %142 = vector.broadcast %139 : vector<32x1xf32> to vector<32x64xf32>
    %143 = arith.addf %141, %142 : vector<32x64xf32>
    %cst_38 = arith.constant 0.000000e+00 : f32
    %144 = vector.broadcast %cst_38 : f32 to vector<32x64xf32>
    %145 = arith.maximumf %143, %144 : vector<32x64xf32>
    %146 = arith.truncf %145 : vector<32x64xf32> to vector<32x64xbf16>
    %c0_39 = arith.constant 0 : index
    %c0_40 = arith.constant 0 : index
    %147 = vector.load %arg10[%c0_39, %c0_40] : memref<32x64xbf16, #tpu.memory_space<vmem>>, vector<32x64xbf16>
    tpu.vector_store %arg10[%c0_39, %c0_40], %146 {strides = array<i32>} : memref<32x64xbf16, #tpu.memory_space<vmem>>, vector<32x64xbf16>,
    return
  }
}

module attributes {stable_mosaic.version = 11 : i64} {
  func.func @_head_kernel(%arg0: memref<2x1024xbf16, #tpu.memory_space<vmem>>, %arg1: memref<1024x40xbf16, #tpu.memory_space<vmem>>, %arg2: memref<1x40xf32, #tpu.memory_space<vmem>>, %arg3: memref<40x81xbf16, #tpu.memory_space<vmem>>, %arg4: memref<1x81xf32, #tpu.memory_space<vmem>>, %arg5: memref<2x81xf32, #tpu.memory_space<vmem>>) attributes {dimension_semantics = [], scalar_prefetch = 0 : i64, scratch_operands = 0 : i64, tpu.core_type = #tpu.core_type<tc>} {
    %c0 = arith.constant 0 : index
    %c0_0 = arith.constant 0 : index
    %0 = vector.load %arg0[%c0, %c0_0] : memref<2x1024xbf16, #tpu.memory_space<vmem>>, vector<2x1024xbf16>
    %c0_1 = arith.constant 0 : index
    %c0_2 = arith.constant 0 : index
    %1 = vector.load %arg1[%c0_1, %c0_2] : memref<1024x40xbf16, #tpu.memory_space<vmem>>, vector<1024x40xbf16>
    %cst = arith.constant dense<0.000000e+00> : vector<2x40xf32>
    %2 = tpu.matmul %0, %1, %cst {dimension_numbers = #tpu.dot_dimension_numbers<[1], [0], [0], [1], [0, 0, 1, 1], [], []>} : vector<2x1024xbf16>, vector<1024x40xbf16>, vector<2x40xf32> -> vector<2x40xf32>
    %c0_3 = arith.constant 0 : index
    %c0_4 = arith.constant 0 : index
    %3 = vector.load %arg2[%c0_3, %c0_4] : memref<1x40xf32, #tpu.memory_space<vmem>>, vector<1x40xf32>
    %4 = vector.broadcast %3 : vector<1x40xf32> to vector<2x40xf32>
    %5 = arith.addf %2, %4 : vector<2x40xf32>
    %6 = arith.truncf %5 : vector<2x40xf32> to vector<2x40xbf16>
    %c0_5 = arith.constant 0 : index
    %c0_6 = arith.constant 0 : index
    %7 = vector.load %arg3[%c0_5, %c0_6] : memref<40x81xbf16, #tpu.memory_space<vmem>>, vector<40x81xbf16>
    %cst_7 = arith.constant dense<0.000000e+00> : vector<2x81xf32>
    %8 = tpu.matmul %6, %7, %cst_7 {dimension_numbers = #tpu.dot_dimension_numbers<[1], [0], [0], [1], [0, 0, 1, 1], [], []>} : vector<2x40xbf16>, vector<40x81xbf16>, vector<2x81xf32> -> vector<2x81xf32>
    %c0_8 = arith.constant 0 : index
    %c0_9 = arith.constant 0 : index
    %9 = vector.load %arg4[%c0_8, %c0_9] : memref<1x81xf32, #tpu.memory_space<vmem>>, vector<1x81xf32>
    %10 = vector.broadcast %9 : vector<1x81xf32> to vector<2x81xf32>
    %11 = arith.addf %8, %10 : vector<2x81xf32>
    %cst_10 = arith.constant dense<0xFF800000> : vector<2xf32>
    %12 = vector.multi_reduction <maximumf>, %11, %cst_10 [1] : vector<2x81xf32> to vector<2xf32>
    %13 = vector.shape_cast %12 : vector<2xf32> to vector<2x1xf32>
    %14 = vector.broadcast %13 : vector<2x1xf32> to vector<2x81xf32>
    %15 = arith.subf %11, %14 : vector<2x81xf32>
    %16 = math.exp %15 : vector<2x81xf32>
    %cst_11 = arith.constant dense<0.000000e+00> : vector<2xf32>
    %17 = vector.multi_reduction <add>, %16, %cst_11 [1] : vector<2x81xf32> to vector<2xf32>
    %18 = vector.shape_cast %17 : vector<2xf32> to vector<2x1xf32>
    %19 = tpu.reciprocal %18 {approx = true} : vector<2x1xf32> -> vector<2x1xf32>
    %20 = vector.broadcast %19 : vector<2x1xf32> to vector<2x81xf32>
    %21 = arith.mulf %16, %20 : vector<2x81xf32>
    %c0_12 = arith.constant 0 : index
    %c0_13 = arith.constant 0 : index
    %22 = vector.load %arg5[%c0_12, %c0_13] : memref<2x81xf32, #tpu.memory_space<vmem>>, vector<2x81xf32>
    tpu.vector_store %arg5[%c0_12, %c0_13], %21 {strides = array<i32>} : memref<2x81xf32, #tpu.memory_space<vmem>>, vector<2x81xf32>,
    return
  }
}

</mosaic_0001>

<bundles_post_ra>
// kernel: squeeze.0
= control target key start
LH: loop header
LB: loop body
LE: loop exit
PB: predicated region body
PF: predicated region fallthrough
CT: control target
= control target key end

     0   :  { %s667_s16 = smov 122   ;;  %s668_s17 = smov 124   ;;  %vm163_vm0 = vcmask 15360   ;;  %vm169_vm1 = vcmask 1048560   ;;  %vm181_vm2 = vcmask 1015760   ;;  %vm175_vm3 = vcmask 1032160   ;;  %s761_s0 = inlined_call_operand.vmem [shape: bf16[2,1,34,2], index: 0, kind: input, shape index: {}]   ;;  %s762_s1 = inlined_call_operand.vmem [shape: bf16[1,136], index: 1, kind: output, shape index: {}]  }
   0x1   :  { %v598_v0 = vld [vmem:[%s761_s0 + $0x20] sm:$0xff]   ;;  %v599_v1 = vld [vmem:[%s761_s0 + $0x18] sm:$0xff]   ;;  %v600_v2 = vld [vmem:[%s761_s0 + $0x10] sm:$0xff]   ;;  %s669_s18 = smov 120   ;;  %s670_s19 = smov 118   ;;  %vm187_vm4 = vcmask 999360  }
   0x2   :  { %v580_v3 = vunpack.c.l.bf16 %v598_v0  ;;  %v585_v4 = vunpack.c.h.bf16 %v599_v1  ;;  %v584_v5 = vunpack.c.l.bf16 %v599_v1  ;;  %v589_v6 = vunpack.c.h.bf16 %v600_v2  ;;  %v601_v7 = vld [vmem:[%s761_s0 + $0x8] sm:$0xff]   ;;  %v595_v8 = vld [vmem:[%s761_s0] sm:$0xff]   ;;  %s666_s0 = smov 126   ;;  %s671_s20 = smov 116  }
   0x3   :  { %v588_v9 = vunpack.c.l.bf16 %v600_v2  ;;  %v593_v10 = vunpack.c.h.bf16 %v601_v7  ;;  %v592_v11 = vunpack.c.l.bf16 %v601_v7  ;;  %v597_v12 = vunpack.c.h.bf16 %v595_v8  ;;  %s672_s21 = smov 114   ;;  %s673_s22 = smov 112  }
   0x4   :  { %36 = vst [vmem:[#allocation1 + $0x40] sm:$0xff] %v580_v3  ;;  %52 = vst [vmem:[#allocation1 + $0x38] sm:$0xff] %v585_v4  ;;  %v596_v13 = vunpack.c.l.bf16 %v595_v8  ;;  %v581_v14 = vunpack.c.h.bf16 %v598_v0  ;;  %s674_s23 = smov 110   ;;  %s675_s24 = smov 108   ;;  %vm193_vm5 = vcmask 982960   ;;  %vm199_vm6 = vcmask 966560  }
   0x5   :  { %68 = vst [vmem:[#allocation1 + $0x30] sm:$0xff] %v584_v5  ;;  %84 = vst [vmem:[#allocation1 + $0x28] sm:$0xff] %v589_v6  ;;  %s676_s25 = smov 106   ;;  %s677_s26 = smov 104   ;;  %vm205_vm7 = vcmask 950160   ;;  %vm211_vm8 = vcmask 933760  }
   0x6   :  { %100 = vst [vmem:[#allocation1 + $0x20] sm:$0xff] %v588_v9  ;;  %116 = vst [vmem:[#allocation1 + $0x18] sm:$0xff] %v593_v10  ;;  %s678_s27 = smov 102   ;;  %s679_s28 = smov 100   ;;  %vm217_vm9 = vcmask 917360   ;;  %vm223_vm10 = vcmask 900960  }
   0x7   :  { %132 = vst [vmem:[#allocation1 + $0x10] sm:$0xff] %v592_v11  ;;  %147 = vst [vmem:[#allocation1 + $0x8] sm:$0xff] %v597_v12  ;;  %s161_s29 = smov 3  ;;  %s680_s30 = smov 98   ;;  %vm229_vm11 = vcmask 884560   ;;  %vm235_vm12 = vcmask 868160  }
   0x8   :  { %160 = vst [vmem:[#allocation1] sm:$0xff] %v596_v13  ;;  %20 = vst [vmem:[#allocation1 + $0x48] sm:$0xff] %v581_v14  ;;  %s681_s2 = smov 96   ;;  %s682_s3 = smov 94   ;;  %vm241_vm13 = vcmask 851760   ;;  %vm247_vm14 = vcmask 835360  }
   0x9   :  { %s683_s4 = smov 92   ;;  %s684_s5 = smov 90   ;;  %vm253_vm15 = vcmask 818960  }
   0xa   :  { %s685_s6 = smov 88   ;;  %s686_s7 = smov 86  }
   0xb   :  { %v166_v15 = vld [vmem:[#allocation1 + $0x45] sm:$0x1]   ;;  %v178_v16 = vld [vmem:[#allocation1 + $0x43] sm:$0x1]   ;;  %v172_v17 = vld [vmem:[#allocation1 + $0x44] sm:$0x1]  }
   0xc   :  { %167 = vrot.lane.b32.xlu0 %v166_v15, %s666_s0  ;;  %179 = vrot.lane.b32.xlu1 %v178_v16, %s667_s16  ;;  %v184_v18 = vld [vmem:[#allocation1 + $0x42] sm:$0x1]   ;;  %v190_v19 = vld [vmem:[#allocation1 + $0x41] sm:$0x1]   ;;  %v196_v20 = vld [vmem:[#allocation1 + $0x40] sm:$0x1]  }
   0xd   :  { %v202_v21 = vld [vmem:[#allocation1 + $0x3f] sm:$0x1]   ;;  %v208_v22 = vld [vmem:[#allocation1 + $0x3e] sm:$0x1]   ;;  %v214_v23 = vld [vmem:[#allocation1 + $0x3d] sm:$0x1]  }
   0xe   :  { %v220_v24 = vld [vmem:[#allocation1 + $0x3c] sm:$0x1]   ;;  %v226_v25 = vld [vmem:[#allocation1 + $0x3b] sm:$0x1]   ;;  %v232_v26 = vld [vmem:[#allocation1 + $0x3a] sm:$0x1]  }
   0xf   :  { %v238_v27 = vld [vmem:[#allocation1 + $0x39] sm:$0x1]   ;;  %v244_v28 = vld [vmem:[#allocation1 + $0x38] sm:$0x1]   ;;  %v250_v29 = vld [vmem:[#allocation1 + $0x37] sm:$0x1]  }
  0x10   :  { %173 = vrot.lane.b32.xlu0 %v172_v17, %s668_s17  ;;  %185 = vrot.lane.b32.xlu1 %v184_v18, %s669_s18  ;;  %v256_v30 = vld [vmem:[#allocation1 + $0x36] sm:$0x1]   ;;  %v162_v31 = vld [vmem:[#allocation1] ss:$70 sm:%s161_s29]   ;;  %v262_v32 = vld [vmem:[#allocation1 + $0x35] sm:$0x1]  }
  0x11   :  { %164 = vst.msk [vmem:[#allocation0] ss:$8 sm:$0x3] %vm163_vm0, %v162_v31   ;;  %v268_v33 = vld [vmem:[#allocation1 + $0x34] sm:$0x1]   ;;  %s687_s8 = smov 84  }
  0x12   :  { %v274_v34 = vld [vmem:[#allocation1 + $0x33] sm:$0x1]   ;;  %v280_v35 = vld [vmem:[#allocation1 + $0x32] sm:$0x1]   ;;  %v286_v36 = vld [vmem:[#allocation1 + $0x31] sm:$0x1]  }
  0x13   :  { %v292_v37 = vld [vmem:[#allocation1 + $0x30] sm:$0x1]   ;;  %v298_v38 = vld [vmem:[#allocation1 + $0x2f] sm:$0x1]   ;;  %v304_v39 = vld [vmem:[#allocation1 + $0x2e] sm:$0x1]  }
  0x14   :  { %191 = vrot.lane.b32.xlu0 %v190_v19, %s670_s19  ;;  %197 = vrot.lane.b32.xlu1 %v196_v20, %s671_s20  ;;  %s688_s9 = smov 82   ;;  %s689_s10 = smov 80   ;;  %v310_v40 = vld [vmem:[#allocation1 + $0x2d] sm:$0x1]   ;;  %v316_v41 = vld [vmem:[#allocation1 + $0x2c] sm:$0x1]  }
  0x15   :  { %s690_s11 = smov 78   ;;  %s691_s12 = smov 76   ;;  %v322_v42 = vld [vmem:[#allocation1 + $0x2b] sm:$0x1]   ;;  %v328_v43 = vld [vmem:[#allocation1 + $0x2a] sm:$0x1]  }
  0x16   :  { %s692_s13 = smov 74   ;;  %s693_s14 = smov 72   ;;  %v334_v44 = vld [vmem:[#allocation1 + $0x29] sm:$0x1]   ;;  %v340_v45 = vld [vmem:[#allocation1 + $0x28] sm:$0x1]  }
  0x17   :  { %s694_s15 = smov 70   ;;  %s695_s0 = smov 68   ;;  %v346_v46 = vld [vmem:[#allocation1 + $0x21] sm:$0x1]   ;;  %v352_v47 = vld [vmem:[#allocation1 + $0x20] sm:$0x1]  }
  0x18   :  { %203 = vrot.lane.b32.xlu0 %v202_v21, %s672_s21  ;;  %209 = vrot.lane.b32.xlu1 %v208_v22, %s673_s22  ;;  %s696_s16 = smov 66   ;;  %s697_s17 = smov 64   ;;  %v358_v48 = vld [vmem:[#allocation1 + $0x1f] sm:$0x1]   ;;  %v364_v49 = vld [vmem:[#allocation1 + $0x1e] sm:$0x1]  }
  0x19   :  { %s698_s18 = smov 62   ;;  %s699_s19 = smov 60   ;;  %v370_v50 = vld [vmem:[#allocation1 + $0x1d] sm:$0x1]   ;;  %v376_v51 = vld [vmem:[#allocation1 + $0x1c] sm:$0x1]  }
  0x1a   :  { %s700_s20 = smov 58   ;;  %s701_s21 = smov 56   ;;  %v382_v52 = vld [vmem:[#allocation1 + $0x1b] sm:$0x1]   ;;  %v388_v53 = vld [vmem:[#allocation1 + $0x1a] sm:$0x1]  }
  0x1b   :  { %s702_s22 = smov 54   ;;  %v394_v54 = vld [vmem:[#allocation1 + $0x19] sm:$0x1]   ;;  %v400_v55 = vld [vmem:[#allocation1 + $0x18] sm:$0x1]   ;;  %s709_s29 = smov 40  }
  0x1c   :  { %215 = vrot.lane.b32.xlu0 %v214_v23, %s674_s23  ;;  %221 = vrot.lane.b32.xlu1 %v220_v24, %s675_s24  ;;  %s703_s23 = smov 52   ;;  %s704_s24 = smov 50   ;;  %v406_v56 = vld [vmem:[#allocation1 + $0x17] sm:$0x1]   ;;  %v412_v57 = vld [vmem:[#allocation1 + $0x16] sm:$0x1]  }
  0x1d   :  { %v418_v58 = vld [vmem:[#allocation1 + $0x15] sm:$0x1]   ;;  %v424_v59 = vld [vmem:[#allocation1 + $0x14] sm:$0x1]   ;;  %v430_v60 = vld [vmem:[#allocation1 + $0x13] sm:$0x1]  }
  0x1e   :  { %v436_v61 = vld [vmem:[#allocation1 + $0x12] sm:$0x1]   ;;  %v442_v62 = vld [vmem:[#allocation1 + $0x11] sm:$0x1]   ;;  %v448_v63 = vld [vmem:[#allocation1 + $0x10] sm:$0x1]  }
  0x1f   :  { %v454_v0 = vld [vmem:[#allocation1 + $0xf] sm:$0x1]   ;;  %v460_v1 = vld [vmem:[#allocation1 + $0xe] sm:$0x1]   ;;  %v466_v2 = vld [vmem:[#allocation1 + $0xd] sm:$0x1]  }
  0x20   :  { %227 = vrot.lane.b32.xlu0 %v226_v25, %s676_s25  ;;  %233 = vrot.lane.b32.xlu1 %v232_v26, %s677_s26  ;;  %s705_s25 = smov 48   ;;  %s706_s26 = smov 46   ;;  %v472_v3 = vld [vmem:[#allocation1 + $0xc] sm:$0x1]   ;;  %v478_v4 = vld [vmem:[#allocation1 + $0xb] sm:$0x1]  }
  0x21   :  { %v484_v5 = vld [vmem:[#allocation1 + $0xa] sm:$0x1]   ;;  %v490_v6 = vld [vmem:[#allocation1 + $0x9] sm:$0x1]   ;;  %v496_v7 = vld [vmem:[#allocation1 + $0x8] sm:$0x1]  }
  0x22   :  { %v502_v8 = vld [vmem:[#allocation1 + $0x7] sm:$0x1]   ;;  %v508_v9 = vld [vmem:[#allocation1 + $0x6] sm:$0x1]   ;;  %v514_v10 = vld [vmem:[#allocation1 + $0x5] sm:$0x1]  }
  0x23   :  { %v520_v11 = vld [vmem:[#allocation1 + $0x4] sm:$0x1]   ;;  %vm259_vm0 = vcmask 802560  }
  0x24   :  { %239 = vrot.lane.b32.xlu0 %v238_v27, %s678_s27  ;;  %245 = vrot.lane.b32.xlu1 %v244_v28, %s679_s28  ;;  %s707_s27 = smov 44   ;;  %s708_s28 = smov 42  }
  0x28   :  { %251 = vrot.lane.b32.xlu0 %v250_v29, %s680_s30  ;;  %257 = vrot.lane.b32.xlu1 %v256_v30, %s681_s2  ;;  %s710_s30 = smov 38   ;;  %s711_s2 = smov 36  }
  0x2c   :  { %263 = vrot.lane.b32.xlu0 %v262_v32, %s682_s3  ;;  %269 = vrot.lane.b32.xlu1 %v268_v33, %s683_s4  ;;  %s712_s3 = smov 34   ;;  %s713_s4 = smov 32  }
  0x30   :  { %275 = vrot.lane.b32.xlu0 %v274_v34, %s684_s5  ;;  %281 = vrot.lane.b32.xlu1 %v280_v35, %s685_s6  ;;  %s714_s5 = smov 30   ;;  %s715_s6 = smov 28  }
  0x34   :  { %287 = vrot.lane.b32.xlu0 %v286_v36, %s686_s7  ;;  %293 = vrot.lane.b32.xlu1 %v292_v37, %s687_s8  ;;  %s716_s7 = smov 26   ;;  %s717_s8 = smov 24  }
  0x38   :  { %299 = vrot.lane.b32.xlu0 %v298_v38, %s688_s9  ;;  %305 = vrot.lane.b32.xlu1 %v304_v39, %s689_s10  ;;  %s718_s9 = smov 22   ;;  %s719_s10 = smov 20  }
  0x3c   :  { %311 = vrot.lane.b32.xlu0 %v310_v40, %s690_s11  ;;  %317 = vrot.lane.b32.xlu1 %v316_v41, %s691_s12  ;;  %s720_s11 = smov 18   ;;  %s721_s12 = smov 16  }
  0x40   :  { %323 = vrot.lane.b32.xlu0 %v322_v42, %s692_s13  ;;  %329 = vrot.lane.b32.xlu1 %v328_v43, %s693_s14  ;;  %s722_s13 = smov 14   ;;  %s723_s14 = smov 12  }
  0x44   :  { %335 = vrot.lane.b32.xlu0 %v334_v44, %s694_s15  ;;  %341 = vrot.lane.b32.xlu1 %v340_v45, %s695_s0  ;;  %s526_s15 = smov 3  ;;  %s533_s0 = smov 3 }
  0x45   :  { %v527_v14 = vld [vmem:[#allocation1 + $0x3] ss:$70 sm:%s526_s15]   ;;  %v534_v15 = vld [vmem:[#allocation1 + $0x2] ss:$70 sm:%s533_s0]  }
  0x48   :  { %347 = vrot.lane.b32.xlu0 %v346_v46, %s696_s16  ;;  %353 = vrot.lane.b32.xlu1 %v352_v47, %s697_s17  ;;  %s724_s16 = smov 10   ;;  %s725_s17 = smov 8  }
  0x4c   :  { %359 = vrot.lane.b32.xlu0 %v358_v48, %s698_s18  ;;  %365 = vrot.lane.b32.xlu1 %v364_v49, %s699_s19  ;;  %s540_s18 = smov 3  ;;  %s726_s19 = smov 6  }
  0x4d   :  { %v541_v18 = vld [vmem:[#allocation1 + $0x1] ss:$70 sm:%s540_s18]  }
  0x50   :  { %371 = vrot.lane.b32.xlu0 %v370_v50, %s700_s20  ;;  %377 = vrot.lane.b32.xlu1 %v376_v51, %s701_s21  ;;  %s727_s20 = smov 4   ;;  %s728_s21 = smov 2  }
  0x54   :  { %383 = vrot.lane.b32.xlu0 %v382_v52, %s702_s22  ;;  %389 = vrot.lane.b32.xlu1 %v388_v53, %s703_s23 }
  0x58   :  { %395 = vrot.lane.b32.xlu0 %v394_v54, %s704_s24  ;;  %401 = vrot.lane.b32.xlu1 %v400_v55, %s705_s25 }
  0x5c   :  { %407 = vrot.lane.b32.xlu0 %v406_v56, %s706_s26  ;;  %413 = vrot.lane.b32.xlu1 %v412_v57, %s707_s27 }
  0x60   :  { %419 = vrot.lane.b32.xlu0 %v418_v58, %s708_s28  ;;  %425 = vrot.lane.b32.xlu1 %v424_v59, %s709_s29 }
  0x64   :  { %431 = vrot.lane.b32.xlu0 %v430_v60, %s710_s30  ;;  %437 = vrot.lane.b32.xlu1 %v436_v61, %s711_s2 }
  0x68   :  { %443 = vrot.lane.b32.xlu0 %v442_v62, %s712_s3  ;;  %449 = vrot.lane.b32.xlu1 %v448_v63, %s713_s4 }
  0x6c   :  { %455 = vrot.lane.b32.xlu0 %v454_v0, %s714_s5  ;;  %461 = vrot.lane.b32.xlu1 %v460_v1, %s715_s6 }
  0x70   :  { %467 = vrot.lane.b32.xlu0 %v466_v2, %s716_s7  ;;  %473 = vrot.lane.b32.xlu1 %v472_v3, %s717_s8 }
  0x74   :  { %479 = vrot.lane.b32.xlu0 %v478_v4, %s718_s9  ;;  %485 = vrot.lane.b32.xlu1 %v484_v5, %s719_s10 }
  0x78   :  { %491 = vrot.lane.b32.xlu0 %v490_v6, %s720_s11  ;;  %497 = vrot.lane.b32.xlu1 %v496_v7, %s721_s12 }
  0x7c   :  { %503 = vrot.lane.b32.xlu0 %v502_v8, %s722_s13  ;;  %509 = vrot.lane.b32.xlu1 %v508_v9, %s723_s14 }
  0x7e   :  { %v168_v12 = vpop.permute.xlu0 %167   ;;  %v180_v13 = vpop.permute.xlu1 %179  }
  0x7f   :  { %170 = vst.msk [vmem:[#allocation0] sm:$0x1] %vm169_vm1, %v168_v12   ;;  %vm265_vm1 = vcmask 786160  }
  0x80   :  { %515 = vrot.lane.b32.xlu0 %v514_v10, %s724_s16  ;;  %521 = vrot.lane.b32.xlu1 %v520_v11, %s725_s17 }
  0x82   :  { %v174_v16 = vpop.permute.xlu0 %173   ;;  %v186_v17 = vpop.permute.xlu1 %185  }
  0x83   :  { %176 = vst.msk [vmem:[#allocation0] sm:$0x1] %vm175_vm3, %v174_v16   ;;  %vm277_vm3 = vcmask 753360   ;;  %v729_v16 = vmov 0.0  }
  0x84   :  { %182 = vst.msk [vmem:[#allocation0] sm:$0x1] %vm181_vm2, %v180_v13   ;;  %528 = vrot.lane.b32.xlu0 %v527_v14, %s726_s19  ;;  %535 = vrot.lane.b32.xlu1 %v534_v15, %s727_s20  ;;  %vm271_vm2 = vcmask 769760  }
  0x85   :  { %188 = vst.msk [vmem:[#allocation0] sm:$0x1] %vm187_vm4, %v186_v17   ;;  %vm283_vm4 = vcmask 736960  }
  0x86   :  { %v192_v19 = vpop.permute.xlu0 %191   ;;  %v198_v20 = vpop.permute.xlu1 %197  }
  0x87   :  { %194 = vst.msk [vmem:[#allocation0] sm:$0x1] %vm193_vm5, %v192_v19   ;;  %vm289_vm5 = vcmask 720560  }
  0x88   :  { %542 = vrot.lane.b32.xlu0 %v541_v18, %s728_s21  ;;  %200 = vst.msk [vmem:[#allocation0] sm:$0x1] %vm199_vm6, %v198_v20   ;;  %vm295_vm6 = vcmask 704160  }
  0x8a   :  { %v204_v21 = vpop.permute.xlu0 %203   ;;  %v210_v22 = vpop.permute.xlu1 %209  }
  0x8b   :  { %206 = vst.msk [vmem:[#allocation0] sm:$0x1] %vm205_vm7, %v204_v21   ;;  %vm301_vm7 = vcmask 687760  }
  0x8c   :  { %212 = vst.msk [vmem:[#allocation0] sm:$0x1] %vm211_vm8, %v210_v22   ;;  %vm307_vm8 = vcmask 671360  }
  0x8e   :  { %v216_v23 = vpop.permute.xlu0 %215   ;;  %v222_v24 = vpop.permute.xlu1 %221  }
  0x8f   :  { %218 = vst.msk [vmem:[#allocation0] sm:$0x1] %vm217_vm9, %v216_v23   ;;  %vm313_vm9 = vcmask 654960  }
  0x90   :  { %224 = vst.msk [vmem:[#allocation0] sm:$0x1] %vm223_vm10, %v222_v24   ;;  %vm319_vm10 = vcmask 638560  }
  0x92   :  { %v228_v25 = vpop.permute.xlu0 %227   ;;  %v234_v26 = vpop.permute.xlu1 %233  }
  0x93   :  { %230 = vst.msk [vmem:[#allocation0] sm:$0x1] %vm229_vm11, %v228_v25   ;;  %vm325_vm11 = vcmask 622160  }
  0x94   :  { %236 = vst.msk [vmem:[#allocation0] sm:$0x1] %vm235_vm12, %v234_v26   ;;  %vm331_vm12 = vcmask 605760  }
  0x96   :  { %v240_v27 = vpop.permute.xlu0 %239   ;;  %v246_v28 = vpop.permute.xlu1 %245  }
  0x97   :  { %242 = vst.msk [vmem:[#allocation0] sm:$0x1] %vm241_vm13, %v240_v27   ;;  %vm337_vm13 = vcmask 589360  }
  0x98   :  { %248 = vst.msk [vmem:[#allocation0] sm:$0x1] %vm247_vm14, %v246_v28   ;;  %vm343_vm14 = vcmask 572960  }
  0x9a   :  { %v252_v29 = vpop.permute.xlu0 %251   ;;  %v258_v30 = vpop.permute.xlu1 %257  }
  0x9b   :  { %254 = vst.msk [vmem:[#allocation0] sm:$0x1] %vm253_vm15, %v252_v29   ;;  %vm349_vm15 = vcmask 556560  }
  0x9c   :  { %260 = vst.msk [vmem:[#allocation0] sm:$0x1] %vm259_vm0, %v258_v30   ;;  %vm355_vm0 = vcmask 540160  }
  0x9e   :  { %v264_v31 = vpop.permute.xlu0 %263   ;;  %v270_v32 = vpop.permute.xlu1 %269  }
  0x9f   :  { %266 = vst.msk [vmem:[#allocation0] sm:$0x1] %vm265_vm1, %v264_v31   ;;  %vm361_vm1 = vcmask 523760  }
  0xa0   :  { %272 = vst.msk [vmem:[#allocation0] sm:$0x1] %vm271_vm2, %v270_v32   ;;  %vm367_vm2 = vcmask 507360  }
  0xa2   :  { %v276_v33 = vpop.permute.xlu0 %275   ;;  %v282_v34 = vpop.permute.xlu1 %281  }
  0xa3   :  { %278 = vst.msk [vmem:[#allocation0] sm:$0x1] %vm277_vm3, %v276_v33   ;;  %vm373_vm3 = vcmask 490960  }
  0xa4   :  { %284 = vst.msk [vmem:[#allocation0] sm:$0x1] %vm283_vm4, %v282_v34   ;;  %vm379_vm4 = vcmask 474560  }
  0xa6   :  { %v288_v35 = vpop.permute.xlu0 %287   ;;  %v294_v36 = vpop.permute.xlu1 %293  }
  0xa7   :  { %290 = vst.msk [vmem:[#allocation0] sm:$0x1] %vm289_vm5, %v288_v35   ;;  %vm385_vm5 = vcmask 458160  }
  0xa8   :  { %296 = vst.msk [vmem:[#allocation0] sm:$0x1] %vm295_vm6, %v294_v36   ;;  %vm391_vm6 = vcmask 441760  }
  0xaa   :  { %v300_v37 = vpop.permute.xlu0 %299   ;;  %v306_v38 = vpop.permute.xlu1 %305  }
  0xab   :  { %302 = vst.msk [vmem:[#allocation0] sm:$0x1] %vm301_vm7, %v300_v37   ;;  %vm397_vm7 = vcmask 425360  }
  0xac   :  { %308 = vst.msk [vmem:[#allocation0] sm:$0x1] %vm307_vm8, %v306_v38   ;;  %vm403_vm8 = vcmask 408960  }
  0xae   :  { %v312_v39 = vpop.permute.xlu0 %311   ;;  %v318_v40 = vpop.permute.xlu1 %317  }
  0xaf   :  { %314 = vst.msk [vmem:[#allocation0] sm:$0x1] %vm313_vm9, %v312_v39   ;;  %vm409_vm9 = vcmask 392560  }
  0xb0   :  { %320 = vst.msk [vmem:[#allocation0] sm:$0x1] %vm319_vm10, %v318_v40   ;;  %vm415_vm10 = vcmask 376160  }
  0xb2   :  { %v324_v41 = vpop.permute.xlu0 %323   ;;  %v330_v42 = vpop.permute.xlu1 %329  }
  0xb3   :  { %326 = vst.msk [vmem:[#allocation0] sm:$0x1] %vm325_vm11, %v324_v41   ;;  %vm421_vm11 = vcmask 359760  }
  0xb4   :  { %332 = vst.msk [vmem:[#allocation0] sm:$0x1] %vm331_vm12, %v330_v42   ;;  %vm427_vm12 = vcmask 343360  }
  0xb6   :  { %v336_v43 = vpop.permute.xlu0 %335   ;;  %v342_v44 = vpop.permute.xlu1 %341  }
  0xb7   :  { %338 = vst.msk [vmem:[#allocation0] sm:$0x1] %vm337_vm13, %v336_v43   ;;  %vm433_vm13 = vcmask 326960  }
  0xb8   :  { %344 = vst.msk [vmem:[#allocation0] sm:$0x1] %vm343_vm14, %v342_v44   ;;  %vm439_vm14 = vcmask 310560  }
  0xba   :  { %v348_v45 = vpop.permute.xlu0 %347   ;;  %v354_v46 = vpop.permute.xlu1 %353  }
  0xbb   :  { %350 = vst.msk [vmem:[#allocation0] sm:$0x1] %vm349_vm15, %v348_v45   ;;  %vm445_vm15 = vcmask 294160  }
  0xbc   :  { %356 = vst.msk [vmem:[#allocation0] sm:$0x1] %vm355_vm0, %v354_v46   ;;  %vm451_vm0 = vcmask 277760  }
  0xbe   :  { %v360_v47 = vpop.permute.xlu0 %359   ;;  %v366_v48 = vpop.permute.xlu1 %365  }
  0xbf   :  { %362 = vst.msk [vmem:[#allocation0] sm:$0x1] %vm361_vm1, %v360_v47   ;;  %vm457_vm1 = vcmask 261360  }
  0xc0   :  { %368 = vst.msk [vmem:[#allocation0] sm:$0x1] %vm367_vm2, %v366_v48   ;;  %vm463_vm2 = vcmask 244960  }
  0xc2   :  { %v372_v49 = vpop.permute.xlu0 %371   ;;  %v378_v50 = vpop.permute.xlu1 %377  }
  0xc3   :  { %374 = vst.msk [vmem:[#allocation0] sm:$0x1] %vm373_vm3, %v372_v49   ;;  %vm469_vm3 = vcmask 228560  }
  0xc4   :  { %380 = vst.msk [vmem:[#allocation0] sm:$0x1] %vm379_vm4, %v378_v50   ;;  %vm475_vm4 = vcmask 212160  }
  0xc6   :  { %v384_v51 = vpop.permute.xlu0 %383   ;;  %v390_v52 = vpop.permute.xlu1 %389  }
  0xc7   :  { %386 = vst.msk [vmem:[#allocation0] sm:$0x1] %vm385_vm5, %v384_v51   ;;  %vm481_vm5 = vcmask 195760  }
  0xc8   :  { %392 = vst.msk [vmem:[#allocation0] sm:$0x1] %vm391_vm6, %v390_v52   ;;  %vm487_vm6 = vcmask 179360  }
  0xca   :  { %v396_v53 = vpop.permute.xlu0 %395   ;;  %v402_v54 = vpop.permute.xlu1 %401  }
  0xcb   :  { %398 = vst.msk [vmem:[#allocation0] sm:$0x1] %vm397_vm7, %v396_v53   ;;  %vm493_vm7 = vcmask 162960  }
  0xcc   :  { %404 = vst.msk [vmem:[#allocation0] sm:$0x1] %vm403_vm8, %v402_v54   ;;  %vm499_vm8 = vcmask 146560  }
  0xce   :  { %v408_v55 = vpop.permute.xlu0 %407   ;;  %v414_v56 = vpop.permute.xlu1 %413  }
  0xcf   :  { %410 = vst.msk [vmem:[#allocation0] sm:$0x1] %vm409_vm9, %v408_v55   ;;  %vm505_vm9 = vcmask 130160  }
  0xd0   :  { %416 = vst.msk [vmem:[#allocation0] sm:$0x1] %vm415_vm10, %v414_v56   ;;  %vm511_vm10 = vcmask 113760  }
  0xd2   :  { %v420_v57 = vpop.permute.xlu0 %419   ;;  %v426_v58 = vpop.permute.xlu1 %425  }
  0xd3   :  { %422 = vst.msk [vmem:[#allocation0] sm:$0x1] %vm421_vm11, %v420_v57   ;;  %vm517_vm11 = vcmask 97360  }
  0xd4   :  { %428 = vst.msk [vmem:[#allocation0] sm:$0x1] %vm427_vm12, %v426_v58   ;;  %vm523_vm12 = vcmask 80960  }
  0xd6   :  { %v432_v59 = vpop.permute.xlu0 %431   ;;  %v438_v60 = vpop.permute.xlu1 %437  }
  0xd7   :  { %434 = vst.msk [vmem:[#allocation0] sm:$0x1] %vm433_vm13, %v432_v59   ;;  %vm530_vm13 = vcmask 64560  }
  0xd8   :  { %440 = vst.msk [vmem:[#allocation0] sm:$0x1] %vm439_vm14, %v438_v60   ;;  %vm537_vm14 = vcmask 48160  }
  0xda   :  { %v444_v61 = vpop.permute.xlu0 %443   ;;  %v450_v62 = vpop.permute.xlu1 %449  }
  0xdb   :  { %446 = vst.msk [vmem:[#allocation0] sm:$0x1] %vm445_vm15, %v444_v61   ;;  %vm544_vm15 = vcmask 31760  }
  0xdc   :  { %452 = vst.msk [vmem:[#allocation0] sm:$0x1] %vm451_vm0, %v450_v62  }
  0xde   :  { %v456_v63 = vpop.permute.xlu0 %455   ;;  %v462_v0 = vpop.permute.xlu1 %461  }
  0xdf   :  { %458 = vst.msk [vmem:[#allocation0] sm:$0x1] %vm457_vm1, %v456_v63  }
  0xe0   :  { %464 = vst.msk [vmem:[#allocation0] sm:$0x1] %vm463_vm2, %v462_v0  }
  0xe2   :  { %v468_v1 = vpop.permute.xlu0 %467   ;;  %v474_v2 = vpop.permute.xlu1 %473  }
  0xe3   :  { %470 = vst.msk [vmem:[#allocation0] sm:$0x1] %vm469_vm3, %v468_v1  }
  0xe4   :  { %476 = vst.msk [vmem:[#allocation0] sm:$0x1] %vm475_vm4, %v474_v2  }
  0xe6   :  { %v480_v3 = vpop.permute.xlu0 %479   ;;  %v486_v4 = vpop.permute.xlu1 %485  }
  0xe7   :  { %482 = vst.msk [vmem:[#allocation0] sm:$0x1] %vm481_vm5, %v480_v3  }
  0xe8   :  { %488 = vst.msk [vmem:[#allocation0] sm:$0x1] %vm487_vm6, %v486_v4  }
  0xea   :  { %v492_v5 = vpop.permute.xlu0 %491   ;;  %v498_v6 = vpop.permute.xlu1 %497  }
  0xeb   :  { %494 = vst.msk [vmem:[#allocation0] sm:$0x1] %vm493_vm7, %v492_v5  }
  0xec   :  { %500 = vst.msk [vmem:[#allocation0] sm:$0x1] %vm499_vm8, %v498_v6  }
  0xee   :  { %v504_v7 = vpop.permute.xlu0 %503   ;;  %v510_v8 = vpop.permute.xlu1 %509  }
  0xef   :  { %506 = vst.msk [vmem:[#allocation0] sm:$0x1] %vm505_vm9, %v504_v7  }
  0xf0   :  { %512 = vst.msk [vmem:[#allocation0] sm:$0x1] %vm511_vm10, %v510_v8  }
  0xf2   :  { %v516_v9 = vpop.permute.xlu0 %515   ;;  %v522_v10 = vpop.permute.xlu1 %521  }
  0xf3   :  { %518 = vst.msk [vmem:[#allocation0] sm:$0x1] %vm517_vm11, %v516_v9  }
  0xf4   :  { %524 = vst.msk [vmem:[#allocation0] sm:$0x1] %vm523_vm12, %v522_v10  }
  0xf6   :  { %v529_v11 = vpop.permute.xlu0 %528   ;;  %v536_v12 = vpop.permute.xlu1 %535  }
  0xf7   :  { %531 = vst.msk [vmem:[#allocation0] ss:$8 sm:$0x3] %vm530_vm13, %v529_v11  }
  0xf8   :  { %538 = vst.msk [vmem:[#allocation0] ss:$8 sm:$0x3] %vm537_vm14, %v536_v12  }
  0xfa   :  { %v543_v13 = vpop.permute.xlu0 %542  }
  0xfb   :  { %545 = vst.msk [vmem:[#allocation0] ss:$8 sm:$0x3] %vm544_vm15, %v543_v13  }
 0x102   :  { %v550_v14 = vld [vmem:[#allocation0] sm:$0x3]  ;;  %v555_v15 = vld [vmem:[#allocation0 + $0x8] sm:$0x3] }
 0x103   :  { %v551_v17 = vpack.c.bf16 %v729_v16, %v550_v14  ;;  %v556_v18 = vpack.c.bf16 %v729_v16, %v555_v15 }
 0x105   :  { %553 = vst [vmem:[%s762_s1] sm:$0x1] %v551_v17  ;;  %577 = vst [vmem:[%s762_s1 + $0x1] sm:$0x1] %v556_v18 }

// kernel: convnet_forward.2
= control target key start
LH: loop header
LB: loop body
LE: loop exit
PB: predicated region body
PF: predicated region fallthrough
CT: control target
= control target key end

     0   :  { %v1071_v1 = vmov 0   ;;  %vm65_vm0 = vcmask 1041408   ;;  %vm61_vm1 = vcmask 162816   ;;  %vm119_vm2 = vcmask 64512   ;;  %s1074_s27 = smov 120   ;;  %s1075_s28 = smov 126   ;;  %s1440_s0 = inlined_call_operand.vmem [shape: bf16[20,136], index: 0, kind: input, shape index: {}]   ;;  %s1441_s1 = inlined_call_operand.vmem [shape: bf16[16,20], index: 1, kind: input, shape index: {}]   ;;  %s1442_s2 = inlined_call_operand.vmem [shape: f32[16,1], index: 2, kind: input, shape index: {}]   ;;  %s1443_s3 = inlined_call_operand.vmem [shape: f32[16,1], index: 3, kind: input, shape index: {}]   ;;  %s1444_s4 = inlined_call_operand.vmem [shape: bf16[32,160], index: 4, kind: input, shape index: {}]   ;;  %s1445_s5 = inlined_call_operand.vmem [shape: f32[32,1], index: 5, kind: input, shape index: {}]   ;;  %s1446_s6 = inlined_call_operand.vmem [shape: f32[32,1], index: 6, kind: input, shape index: {}]   ;;  %s1447_s7 = inlined_call_operand.vmem [shape: bf16[32,320], index: 7, kind: input, shape index: {}]   ;;  %s1448_s8 = inlined_call_operand.vmem [shape: f32[32,1], index: 8, kind: input, shape index: {}]   ;;  %s1449_s9 = inlined_call_operand.vmem [shape: f32[32,1], index: 9, kind: input, shape index: {}]   ;;  %s1450_s10 = inlined_call_operand.vmem [shape: bf16[32,64], index: 10, kind: output, shape index: {}]  }
   0x1   :  { %v40_v0 = vld [vmem:[%s1440_s0 + $0x10] sm:$0x33]  ;;  %104 = vmatprep.mubr.bf16.mxu0 %v1071_v1  ;;  %1029 = vset.pattern.permute.xlu0 %v1071_v1  ;;  %v1031_v2 = vld [vmem:[%s1440_s0 + $0x4] ss:$8 sps:$4 sm:$0xff]   ;;  %v1034_v4 = vld [vmem:[%s1440_s0] ss:$8 sps:$4 sm:$0xff]  }
   0x2   :  { %v939_v3 = vcombine.high %v40_v0, %v40_v0  ;;  %v938_v5 = vcombine.low %v40_v0, %v40_v0  ;;  %1030 = vset.pattern.permute.xlu1 %v1071_v1  ;;  %315 = vmatprep.subr.bf16.mxu1 %v1071_v1  ;;  %v1036_v7 = vld [vmem:[%s1441_s1] sm:$0xff]   ;;  %v116_v41 = vld [vmem:[%s1442_s2 + $0x8] sm:$0xff]  ;;  %s1076_s29 = smov 118   ;;  %s1077_s30 = smov 108   ;;  %vm308_vm3 = vcmask 261120   ;;  %vm195_vm4 = vcmask 408576  }
   0x3   :  { %72 = vmatprep.subr.bf16.mxu0 %v1031_v2  ;;  %v115_v38 = vld [vmem:[%s1442_s2] sm:$0xff]  ;;  %v118_v48 = vld [vmem:[%s1443_s3 + $0x8] sm:$0xff]  ;;  %s1072_s2 = smov 122   ;;  %s1078_s11 = smov 98   ;;  %vm247_vm5 = vcmask 801792   ;;  %vm259_vm6 = vcmask 785408  }
   0x4   :  { %73 = vmatpush1.bf16.msra.mxu0 %v1034_v4  ;;  %v67_v6 = vsel %vm65_vm0, %v938_v5, 0  ;;  %v117_v45 = vld [vmem:[%s1443_s3] sm:$0xff]  ;;  %s1073_s3 = smov 110   ;;  %s1079_s12 = smov 124   ;;  %vm271_vm7 = vcmask 769024   ;;  %vm281_vm8 = vcmask 752640  }
   0x5   :  { %940 = vmatprep.subr.msk.bf16.mxu0 %vm65_vm0, %v939_v3  ;;  %s1080_s13 = smov 116   ;;  %s1081_s14 = smov 106   ;;  %v1039_v5 = vld [vmem:[%s1444_s4 + $0x4] ss:$8 sps:$4 sm:$0xff]   ;;  %vm372_vm9 = vcmask 818176   ;;  %vm681_vm10 = vcmask 523264  }
   0x6   :  { %s1082_s15 = smov 96   ;;  %s1083_s16 = smov 104   ;;  %946 = vmatprep.mubr.msk.bf16.mxu1 %vm308_vm3, %v1039_v5  ;;  %vm926_vm11 = vcmask 519168  }
   0x7   :  { %s1084_s17 = smov 94   ;;  %s1085_s18 = smov 102  }
   0x8   :  { %75 = vmatpush1.bf16.msra.mxu0 %v67_v6  ;;  %s1086_s19 = smov 112   ;;  %s1087_s20 = smov 100  }
   0x9   :  { %s1451_s0 = smov 92   ;;  %s1089_s22 = smov 114  }
   0xb   :  { %941 = vmatmul.mubr.msk.bf16.vlgmr.msra.gmra.mrb[0].mxu0 %vm61_vm1, %v1036_v7 }
  0xde   :  { %v106_v8 = vpop.f32.mrb[0].mxu0 }
  0xdf   :  { %v108_v9 = vpop.f32.mrb[1].mxu0  ;;  %v130_v15 = vmul.f32 %v106_v8, %v106_v8 }
  0xe0   :  { %v110_v10 = vpop.f32.mrb[2].mxu0  ;;  %v120_v11 = vsel %vm119_vm2, %v108_v9, 0.0  ;;  %v131_v12 = vmul.f32 %v108_v9, %v108_v9 }
  0xe1   :  { %v112_v13 = vpop.f32.mrb[3].mxu0  ;;  %v121_v14 = vadd.f32 %v120_v11, %v106_v8  ;;  %v132_v21 = vmul.f32 %v110_v10, %v110_v10 }
  0xe2   :  { %v133_v16 = vmul.f32 %v112_v13, %v112_v13  ;;  %v134_v17 = vsel %vm119_vm2, %v131_v12, 0.0  ;;  %v124_v18 = vsel %vm119_vm2, %v112_v13, 0.0 }
  0xe3   :  { %122 = vadd.xlane.f32.xlu0 %v121_v14  ;;  %v135_v19 = vadd.f32 %v134_v17, %v130_v15  ;;  %v125_v20 = vadd.f32 %v124_v18, %v110_v10 }
  0xe4   :  { %v138_v22 = vsel %vm119_vm2, %v133_v16, 0.0 }
  0xe5   :  { %136 = vadd.xlane.f32.xlu1 %v135_v19  ;;  %v139_v23 = vadd.f32 %v138_v22, %v132_v21 }
  0xe7   :  { %126 = vadd.xlane.f32.xlu0 %v125_v20 }
  0xe9   :  { %140 = vadd.xlane.f32.xlu1 %v139_v23 }
 0x170   :  { %v123_v24 = vpop.xlane.xlu0 %122 }
 0x171   :  { %v128_v25 = vmul.f32 0.007352941, %v123_v24 }
 0x172   :  { %v137_v26 = vpop.xlane.xlu1 %136 }
 0x173   :  { %v144_v27 = vmul.f32 %v128_v25, %v128_v25  ;;  %v142_v28 = vmul.f32 0.007352941, %v137_v26 }
 0x174   :  { %v127_v29 = vpop.xlane.xlu0 %126 }
 0x175   :  { %v146_v30 = vsub.f32 %v142_v28, %v144_v27  ;;  %v129_v31 = vmul.f32 0.007352941, %v127_v29 }
 0x176   :  { %v141_v32 = vpop.xlane.xlu1 %140 }
 0x177   :  { %v148_v33 = vadd.f32 1e-05, %v146_v30  ;;  %v145_v34 = vmul.f32 %v129_v31, %v129_v31  ;;  %v143_v35 = vmul.f32 0.007352941, %v141_v32 }
 0x179   :  { %1051 = vrsqrt.f32 %v148_v33  ;;  %v147_v36 = vsub.f32 %v143_v35, %v145_v34 }
 0x17b   :  { %v149_v37 = vadd.f32 1e-05, %v147_v36 }
 0x17d   :  { %1053 = vrsqrt.f32 %v149_v37 }
 0x183   :  { %v1052_v39 = vpop.eup %1051 }
 0x184   :  { %v152_v40 = vmul.f32 %v1052_v39, %v115_v38 }
 0x186   :  { %160 = vperm.xlu0 %1029, %v152_v40   ;;  %v154_v44 = vmul.f32 %v152_v40, %v128_v25 }
 0x187   :  { %v1054_v42 = vpop.eup %1053 }
 0x188   :  { %v153_v43 = vmul.f32 %v1054_v42, %v116_v41  ;;  %v156_v46 = vsub.f32 %v117_v45, %v154_v44  ;;  %v1037_v42 = vld [vmem:[%s1444_s4] ss:$8 sps:$4 sm:$0xff]   ;;  %v1042_v44 = vld [vmem:[%s1444_s4 + $0x10] ss:$8 sps:$4 sm:$0xff]  }
 0x18a   :  { %165 = vperm.xlu1 %1030, %v153_v43   ;;  %v155_v47 = vmul.f32 %v153_v43, %v129_v31  ;;  %v1040_v43 = vld [vmem:[%s1444_s4 + $0x14] ss:$8 sps:$4 sm:$0xff]  }
 0x18c   :  { %v157_v49 = vsub.f32 %v118_v48, %v155_v47 }
 0x18e   :  { %174 = vperm.xlu1 %1030, %v156_v46  }
 0x192   :  { %179 = vperm.xlu1 %1030, %v157_v49  }
 0x205   :  { %v161_v51 = vpop.permute.xlu0 %160 }
 0x206   :  { %v168_v53 = vmul.f32 %v161_v51, %v106_v8  ;;  %v169_v54 = vmul.f32 %v161_v51, %v108_v9 }
 0x209   :  { %v166_v50 = vpop.permute.xlu1 %165 }
 0x20a   :  { %v170_v55 = vmul.f32 %v166_v50, %v110_v10  ;;  %v171_v56 = vmul.f32 %v166_v50, %v112_v13 }
 0x20d   :  { %v175_v52 = vpop.permute.xlu1 %174 }
 0x20e   :  { %v182_v57 = vadd.f32 %v175_v52, %v168_v53  ;;  %v183_v58 = vadd.f32 %v175_v52, %v169_v54 }
 0x210   :  { %v186_v62 = vmax.f32 %v182_v57, 0.0  ;;  %v187_v63 = vmax.f32 %v183_v58, 0.0 }
 0x211   :  { %v180_v59 = vpop.permute.xlu1 %179 }
 0x212   :  { %v184_v60 = vadd.f32 %v180_v59, %v170_v55  ;;  %v185_v61 = vadd.f32 %v180_v59, %v171_v56 }
 0x214   :  { %v188_v0 = vmax.f32 %v184_v60, 0.0  ;;  %v189_v2 = vmax.f32 %v185_v61, 0.0 }
 0x216   :  { %v190_v3 = vpack.c.bf16 %v188_v0, %v186_v62  ;;  %v191_v4 = vpack.c.bf16 %v189_v2, %v187_v63 }
 0x218   :  { %216 = vrot.lane.b32.xlu0 %v190_v3, %s1072_s2  ;;  %193 = vrot.lane.b32.xlu1 %v190_v3, %s1073_s3 }
 0x21c   :  { %224 = vrot.lane.b32.xlu0 %v190_v3, %s1074_s27  ;;  %200 = vrot.lane.b32.xlu1 %v190_v3, %s1075_s28 }
 0x220   :  { %232 = vrot.lane.b32.xlu0 %v190_v3, %s1076_s29  ;;  %202 = vrot.lane.b32.xlu1 %v190_v3, %s1077_s30 }
 0x224   :  { %243 = vrot.lane.b32.xlu0 %v190_v3, %s1078_s11  ;;  %208 = vrot.lane.b32.xlu1 %v190_v3, %s1079_s12 }
 0x228   :  { %240 = vrot.lane.b32.xlu0 %v190_v3, %s1080_s13  ;;  %210 = vrot.lane.b32.xlu1 %v190_v3, %s1081_s14 }
 0x22c   :  { %257 = vrot.lane.b32.xlu0 %v191_v4, %s1082_s15  ;;  %218 = vrot.lane.b32.xlu1 %v190_v3, %s1083_s16 }
 0x230   :  { %267 = vrot.lane.b32.xlu0 %v190_v3, %s1084_s17  ;;  %226 = vrot.lane.b32.xlu1 %v190_v3, %s1085_s18 }
 0x234   :  { %265 = vrot.lane.b32.xlu0 %v190_v3, %s1086_s19  ;;  %234 = vrot.lane.b32.xlu1 %v190_v3, %s1087_s20 }
 0x238   :  { %279 = vrot.lane.b32.xlu0 %v191_v4, %s1451_s0  ;;  %245 = vrot.lane.b32.xlu1 %v191_v4, %s1078_s11 }
 0x23c   :  { %255 = vrot.lane.b32.xlu1 %v190_v3, %s1082_s15 }
 0x240   :  { %253 = vrot.lane.b32.xlu1 %v190_v3, %s1089_s22 }
 0x244   :  { %269 = vrot.lane.b32.xlu1 %v191_v4, %s1084_s17 }
 0x248   :  { %277 = vrot.lane.b32.xlu1 %v190_v3, %s1451_s0 }
 0x28a   :  { %v217_v6 = vpop.permute.xlu0 %216  ;;  %v194_v7 = vpop.permute.xlu1 %193 }
 0x28b   :  { %v198_v8 = vsel %vm195_vm4, %v190_v3, %v194_v7 }
 0x28c   :  { %316 = vmatpush1.bf16.msra.mxu1 %v198_v8 }
 0x28d   :  { %317 = vmatprep.subr.bf16.mxu1 %v1071_v1 }
 0x28e   :  { %v201_v9 = vpop.permute.xlu1 %200  ;;  %v225_v10 = vpop.permute.xlu0 %224 }
 0x292   :  { %v203_v11 = vpop.permute.xlu1 %202  ;;  %v233_v13 = vpop.permute.xlu0 %232 }
 0x293   :  { %v206_v12 = vsel %vm195_vm4, %v201_v9, %v203_v11 }
 0x294   :  { %318 = vmatpush1.bf16.msra.mxu1 %v206_v12 }
 0x295   :  { %319 = vmatprep.subr.bf16.mxu1 %v1071_v1 }
 0x296   :  { %v209_v14 = vpop.permute.xlu1 %208  ;;  %v244_v17 = vpop.permute.xlu0 %243 }
 0x29a   :  { %v211_v15 = vpop.permute.xlu1 %210  ;;  %v241_v20 = vpop.permute.xlu0 %240 }
 0x29b   :  { %v214_v16 = vsel %vm195_vm4, %v209_v14, %v211_v15 }
 0x29c   :  { %320 = vmatpush1.bf16.msra.mxu1 %v214_v16 }
 0x29d   :  { %321 = vmatprep.subr.bf16.mxu1 %v1071_v1 }
 0x29e   :  { %v219_v18 = vpop.permute.xlu1 %218  ;;  %v258_v25 = vpop.permute.xlu0 %257 }
 0x29f   :  { %v222_v19 = vsel %vm195_vm4, %v217_v6, %v219_v18 }
 0x2a0   :  { %322 = vmatpush1.bf16.msra.mxu1 %v222_v19 }
 0x2a1   :  { %323 = vmatprep.subr.bf16.mxu1 %v1071_v1 }
 0x2a2   :  { %v227_v21 = vpop.permute.xlu1 %226  ;;  %v268_v29 = vpop.permute.xlu0 %267 }
 0x2a3   :  { %v230_v22 = vsel %vm195_vm4, %v225_v10, %v227_v21 }
 0x2a4   :  { %324 = vmatpush1.bf16.msra.mxu1 %v230_v22 }
 0x2a5   :  { %325 = vmatprep.subr.bf16.mxu1 %v1071_v1 }
 0x2a6   :  { %v235_v23 = vpop.permute.xlu1 %234  ;;  %v266_v34 = vpop.permute.xlu0 %265 }
 0x2a7   :  { %v238_v24 = vsel %vm195_vm4, %v233_v13, %v235_v23 }
 0x2a8   :  { %326 = vmatpush1.bf16.msra.mxu1 %v238_v24 }
 0x2a9   :  { %327 = vmatprep.subr.bf16.mxu1 %v1071_v1 }
 0x2aa   :  { %v246_v26 = vpop.permute.xlu1 %245  ;;  %v280_v38 = vpop.permute.xlu0 %279 }
 0x2ab   :  { %v248_v27 = vsel %vm247_vm5, %v244_v17, %v246_v26 }
 0x2ac   :  { %v251_v28 = vsel %vm195_vm4, %v241_v20, %v248_v27 }
 0x2ad   :  { %328 = vmatpush1.bf16.msra.mxu1 %v251_v28 }
 0x2ae   :  { %v256_v30 = vpop.permute.xlu1 %255  ;;  %329 = vmatprep.subr.bf16.mxu1 %v1071_v1 }
 0x2af   :  { %v260_v31 = vsel %vm259_vm6, %v256_v30, %v258_v25 }
 0x2b2   :  { %v254_v32 = vpop.permute.xlu1 %253 }
 0x2b3   :  { %v263_v33 = vsel %vm195_vm4, %v254_v32, %v260_v31  ;;  %v364_v31 = vld [vmem:[%s1445_s5] sm:$0xff] }
 0x2b4   :  { %330 = vmatpush1.bf16.msra.mxu1 %v263_v33 }
 0x2b5   :  { %331 = vmatprep.subr.bf16.mxu1 %v1071_v1 }
 0x2b6   :  { %v270_v35 = vpop.permute.xlu1 %269 }
 0x2b7   :  { %v272_v36 = vsel %vm271_vm7, %v268_v29, %v270_v35  ;;  %v365_v29 = vld [vmem:[%s1445_s5 + $0x8] sm:$0xff] }
 0x2b8   :  { %v275_v37 = vsel %vm195_vm4, %v266_v34, %v272_v36  ;;  %v369_v36 = vld [vmem:[%s1446_s6 + $0x8] sm:$0xff] }
 0x2b9   :  { %332 = vmatpush1.bf16.msra.mxu1 %v275_v37  ;;  %v368_v37 = vld [vmem:[%s1446_s6] sm:$0xff] }
 0x2ba   :  { %v278_v39 = vpop.permute.xlu1 %277  ;;  %333 = vmatprep.subr.bf16.mxu1 %v1071_v1 }
 0x2bb   :  { %v282_v40 = vsel %vm281_vm8, %v278_v39, %v280_v38 }
 0x2bc   :  { %v284_v41 = vsel %vm195_vm4, %v194_v7, %v282_v40 }
 0x2bd   :  { %334 = vmatpush1.bf16.msra.mxu1 %v284_v41  ;;  %v366_v41 = vld [vmem:[%s1445_s5 + $0x10] sm:$0xff] }
 0x2c0   :  { %348 = vmatmul.mubr.bf16.vlgmr.msra.gmra.mrb[0].mxu1 %v1037_v42  ;;  %v367_v42 = vld [vmem:[%s1445_s5 + $0x18] sm:$0xff] }
 0x2c1   :  { %947 = vmatprep.mubr.msk.bf16.mxu1 %vm308_vm3, %v1040_v43 }
 0x2c8   :  { %356 = vmatmul.mubr.bf16.gmra.mrb[4].mxu1 %v1042_v44 }
 0x393   :  { %v1232_v1 = vpop.f32.mrb[0].mxu1 }
 0x394   :  { %v351_v45 = vpop.f32.mrb[1].mxu1  ;;  %v373_v46 = vsel %vm372_vm9, %v1232_v1, 0.0  ;;  %v389_v51 = vmul.f32 %v1232_v1, %v1232_v1 }
 0x395   :  { %374 = vadd.xlane.f32.xlu1 %v373_v46  ;;  %v1236_v47 = vpop.f32.mrb[2].mxu1 }
 0x396   :  { %v354_v48 = vpop.f32.mrb[3].mxu1  ;;  %v376_v49 = vsel %vm372_vm9, %v1236_v47, 0.0  ;;  %v390_v50 = vmul.f32 %v1236_v47, %v1236_v47  ;;  %v393_v53 = vsel %vm372_vm9, %v389_v51, 0.0 }
 0x397   :  { %377 = vadd.xlane.f32.xlu0 %v376_v49  ;;  %v370_v48 = vld [vmem:[%s1446_s6 + $0x10] sm:$0xff] }
 0x398   :  { %v396_v52 = vsel %vm372_vm9, %v390_v50, 0.0  ;;  %v371_v50 = vld [vmem:[%s1446_s6 + $0x18] sm:$0xff] }
 0x399   :  { %397 = vadd.xlane.f32.xlu1 %v396_v52 }
 0x39b   :  { %394 = vadd.xlane.f32.xlu0 %v393_v53  ;;  %v1246_v54 = vpop.f32.mrb[4].mxu1 }
 0x39c   :  { %v359_v55 = vpop.f32.mrb[5].mxu1  ;;  %v379_v56 = vsel %vm372_vm9, %v1246_v54, 0.0  ;;  %v391_v57 = vmul.f32 %v1246_v54, %v1246_v54 }
 0x39d   :  { %v1252_v58 = vpop.f32.mrb[6].mxu1 }
 0x39e   :  { %v382_v59 = vsel %vm372_vm9, %v1252_v58, 0.0  ;;  %v392_v60 = vmul.f32 %v1252_v58, %v1252_v58  ;;  %v362_v61 = vpop.f32.mrb[7].mxu1  ;;  %v399_v62 = vsel %vm372_vm9, %v391_v57, 0.0 }
 0x39f   :  { %380 = vadd.xlane.f32.xlu0 %v379_v56  ;;  %383 = vadd.xlane.f32.xlu1 %v382_v59 }
 0x3a0   :  { %v402_v63 = vsel %vm372_vm9, %v392_v60, 0.0 }
 0x3a3   :  { %400 = vadd.xlane.f32.xlu0 %v399_v62  ;;  %403 = vadd.xlane.f32.xlu1 %v402_v63 }
 0x422   :  { %v375_v0 = vpop.xlane.xlu1 %374 }
 0x423   :  { %v385_v3 = vmul.f32 0.01, %v375_v0 }
 0x424   :  { %v378_v2 = vpop.xlane.xlu0 %377 }
 0x425   :  { %v386_v4 = vmul.f32 0.01, %v378_v2  ;;  %v409_v9 = vmul.f32 %v385_v3, %v385_v3 }
 0x426   :  { %v398_v5 = vpop.xlane.xlu1 %397 }
 0x427   :  { %v410_v6 = vmul.f32 %v386_v4, %v386_v4  ;;  %v406_v7 = vmul.f32 0.01, %v398_v5 }
 0x428   :  { %v395_v8 = vpop.xlane.xlu0 %394 }
 0x429   :  { %v414_v10 = vsub.f32 %v406_v7, %v410_v6  ;;  %v405_v11 = vmul.f32 0.01, %v395_v8 }
 0x42b   :  { %v418_v12 = vadd.f32 1e-05, %v414_v10  ;;  %v413_v13 = vsub.f32 %v405_v11, %v409_v9 }
 0x42c   :  { %v381_v14 = vpop.xlane.xlu0 %380  ;;  %v384_v15 = vpop.xlane.xlu1 %383 }
 0x42d   :  { %1055 = vrsqrt.f32 %v418_v12  ;;  %v417_v16 = vadd.f32 1e-05, %v413_v13  ;;  %v387_v17 = vmul.f32 0.01, %v381_v14  ;;  %v388_v18 = vmul.f32 0.01, %v384_v15 }
 0x42f   :  { %1057 = vrsqrt.f32 %v417_v16  ;;  %v411_v19 = vmul.f32 %v387_v17, %v387_v17  ;;  %v412_v20 = vmul.f32 %v388_v18, %v388_v18 }
 0x430   :  { %v401_v21 = vpop.xlane.xlu0 %400  ;;  %v404_v22 = vpop.xlane.xlu1 %403 }
 0x431   :  { %v407_v23 = vmul.f32 0.01, %v401_v21  ;;  %v408_v24 = vmul.f32 0.01, %v404_v22 }
 0x433   :  { %v415_v25 = vsub.f32 %v407_v23, %v411_v19  ;;  %v416_v26 = vsub.f32 %v408_v24, %v412_v20 }
 0x435   :  { %v419_v27 = vadd.f32 1e-05, %v415_v25  ;;  %v420_v28 = vadd.f32 1e-05, %v416_v26 }
 0x437   :  { %v1056_v30 = vpop.eup %1055  ;;  %1059 = vrsqrt.f32 %v419_v27 }
 0x438   :  { %1061 = vrsqrt.f32 %v420_v28  ;;  %v426_v32 = vmul.f32 %v1056_v30, %v365_v29 }
 0x439   :  { %v1058_v33 = vpop.eup %1057 }
 0x43a   :  { %444 = vperm.xlu1 %1030, %v426_v32   ;;  %v425_v34 = vmul.f32 %v1058_v33, %v364_v31  ;;  %v430_v35 = vmul.f32 %v426_v32, %v386_v4 }
 0x43c   :  { %439 = vperm.xlu0 %1029, %v425_v34   ;;  %v429_v38 = vmul.f32 %v425_v34, %v385_v3  ;;  %v434_v39 = vsub.f32 %v369_v36, %v430_v35 }
 0x43e   :  { %v433_v40 = vsub.f32 %v368_v37, %v429_v38 }
 0x440   :  { %468 = vperm.xlu0 %1029, %v434_v39   ;;  %463 = vperm.xlu1 %1030, %v433_v40  }
 0x441   :  { %v1060_v43 = vpop.eup %1059 }
 0x442   :  { %v1062_v44 = vpop.eup %1061  ;;  %v427_v45 = vmul.f32 %v1060_v43, %v366_v41 }
 0x443   :  { %v428_v46 = vmul.f32 %v1062_v44, %v367_v42 }
 0x444   :  { %449 = vperm.xlu1 %1030, %v427_v45   ;;  %v431_v49 = vmul.f32 %v427_v45, %v387_v17 }
 0x445   :  { %454 = vperm.xlu0 %1029, %v428_v46   ;;  %v432_v51 = vmul.f32 %v428_v46, %v388_v18 }
 0x446   :  { %v435_v52 = vsub.f32 %v370_v48, %v431_v49 }
 0x447   :  { %v436_v53 = vsub.f32 %v371_v50, %v432_v51 }
 0x448   :  { %473 = vperm.xlu1 %1030, %v435_v52  }
 0x449   :  { %478 = vperm.xlu0 %1029, %v436_v53  }
 0x4b9   :  { %v445_v55 = vpop.permute.xlu1 %444 }
 0x4ba   :  { %v458_v57 = vmul.f32 %v445_v55, %v1236_v47 }
 0x4bb   :  { %v440_v56 = vpop.permute.xlu0 %439 }
 0x4bc   :  { %v457_v59 = vmul.f32 %v440_v56, %v1232_v1 }
 0x4bf   :  { %v469_v60 = vpop.permute.xlu0 %468  ;;  %v464_v61 = vpop.permute.xlu1 %463 }
 0x4c0   :  { %v482_v62 = vadd.f32 %v469_v60, %v458_v57  ;;  %v481_v63 = vadd.f32 %v464_v61, %v457_v59  ;;  %v1043_v61 = vld [vmem:[%s1447_s7] ss:$12 sps:$4 sm:$0xff]  }
 0x4c2   :  { %v486_v0 = vmax.f32 %v482_v62, 0.0  ;;  %v485_v2 = vmax.f32 %v481_v63, 0.0  ;;  %v1046_v62 = vld [vmem:[%s1447_s7 + $0x1c] ss:$12 sps:$4 sm:$0xff]  }
 0x4c3   :  { %v450_v3 = vpop.permute.xlu1 %449 }
 0x4c4   :  { %v489_v4 = vpack.c.bf16 %v486_v0, %v485_v2  ;;  %v455_v5 = vpop.permute.xlu0 %454  ;;  %v459_v6 = vmul.f32 %v450_v3, %v1246_v54  ;;  %v1045_v54 = vld [vmem:[%s1447_s7 + $0x4] ss:$12 sps:$4 sm:$0xff]  }
 0x4c5   :  { %v460_v7 = vmul.f32 %v455_v5, %v1252_v58  ;;  %720 = vmatprep.mubr.bf16.mxu0 %v1045_v54 }
 0x4c6   :  { %557 = vrot.lane.b32.xlu0 %v489_v4, %s1085_s18  ;;  %553 = vrot.lane.b32.xlu1 %v489_v4, %s1074_s27 }
 0x4c7   :  { %v474_v47 = vpop.permute.xlu1 %473 }
 0x4c8   :  { %v479_v8 = vpop.permute.xlu0 %478  ;;  %v483_v1 = vadd.f32 %v474_v47, %v459_v6  ;;  %v1048_v6 = vld [vmem:[%s1447_s7 + $0x18] ss:$12 sps:$4 sm:$0xff]  }
 0x4c9   :  { %v484_v9 = vadd.f32 %v479_v8, %v460_v7  ;;  %v1049_v7 = vld [vmem:[%s1447_s7 + $0x8] ss:$12 sps:$4 sm:$0xff]  }
 0x4ca   :  { %v487_v10 = vmax.f32 %v483_v1, 0.0  ;;  %573 = vrot.lane.b32.xlu0 %v489_v4, %s1087_s20  ;;  %493 = vrot.lane.b32.xlu1 %v489_v4, %s1073_s3 }
 0x4cb   :  { %v488_v11 = vmax.f32 %v484_v9, 0.0 }
 0x4cd   :  { %v490_v12 = vpack.c.bf16 %v488_v11, %v487_v10  ;;  %v1050_v10 = vld [vmem:[%s1447_s7 + $0x20] ss:$12 sps:$4 sm:$0xff]  }
 0x4ce   :  { %509 = vrot.lane.b32.xlu0 %v489_v4, %s1077_s30  ;;  %569 = vrot.lane.b32.xlu1 %v489_v4, %s1076_s29 }
 0x4d2   :  { %589 = vrot.lane.b32.xlu0 %v489_v4, %s1078_s11  ;;  %505 = vrot.lane.b32.xlu1 %v489_v4, %s1075_s28 }
 0x4d6   :  { %525 = vrot.lane.b32.xlu0 %v489_v4, %s1081_s14  ;;  %585 = vrot.lane.b32.xlu1 %v489_v4, %s1080_s13 }
 0x4da   :  { %605 = vrot.lane.b32.xlu0 %v489_v4, %s1082_s15  ;;  %521 = vrot.lane.b32.xlu1 %v489_v4, %s1079_s12 }
 0x4de   :  { %541 = vrot.lane.b32.xlu0 %v489_v4, %s1083_s16  ;;  %601 = vrot.lane.b32.xlu1 %v489_v4, %s1089_s22 }
 0x4e2   :  { %537 = vrot.lane.b32.xlu1 %v489_v4, %s1072_s2  ;;  %555 = vrot.lane.b32.xlu0 %v490_v12, %s1074_s27 }
 0x4e6   :  { %559 = vrot.lane.b32.xlu1 %v490_v12, %s1085_s18  ;;  %495 = vrot.lane.b32.xlu0 %v490_v12, %s1073_s3  ;;  %s1453_s3 = smov 92  }
 0x4ea   :  { %571 = vrot.lane.b32.xlu1 %v490_v12, %s1076_s29  ;;  %575 = vrot.lane.b32.xlu0 %v490_v12, %s1087_s20 }
 0x4ee   :  { %507 = vrot.lane.b32.xlu1 %v490_v12, %s1075_s28  ;;  %511 = vrot.lane.b32.xlu0 %v490_v12, %s1077_s30 }
 0x4f2   :  { %587 = vrot.lane.b32.xlu1 %v490_v12, %s1080_s13  ;;  %591 = vrot.lane.b32.xlu0 %v490_v12, %s1078_s11 }
 0x4f6   :  { %523 = vrot.lane.b32.xlu1 %v490_v12, %s1079_s12  ;;  %527 = vrot.lane.b32.xlu0 %v490_v12, %s1081_s14 }
 0x4fa   :  { %603 = vrot.lane.b32.xlu1 %v490_v12, %s1089_s22  ;;  %607 = vrot.lane.b32.xlu0 %v490_v12, %s1082_s15 }
 0x4fe   :  { %539 = vrot.lane.b32.xlu1 %v490_v12, %s1072_s2  ;;  %543 = vrot.lane.b32.xlu0 %v490_v12, %s1083_s16 }
 0x502   :  { %617 = vrot.lane.b32.xlu1 %v489_v4, %s1086_s19  ;;  %621 = vrot.lane.b32.xlu0 %v489_v4, %s1084_s17 }
 0x506   :  { %619 = vrot.lane.b32.xlu1 %v490_v12, %s1086_s19  ;;  %623 = vrot.lane.b32.xlu0 %v490_v12, %s1084_s17 }
 0x50a   :  { %633 = vrot.lane.b32.xlu1 %v489_v4, %s1453_s3  ;;  %635 = vrot.lane.b32.xlu0 %v490_v12, %s1453_s3 }
 0x538   :  { %v558_v58 = vpop.permute.xlu0 %557  ;;  %v554_v13 = vpop.permute.xlu1 %553 }
 0x539   :  { %v563_v14 = vsel %vm308_vm3, %v554_v13, %v558_v58 }
 0x53a   :  { %964 = vmatprep.subr.bf16.mxu0 %v563_v14 }
 0x53c   :  { %v574_v15 = vpop.permute.xlu0 %573  ;;  %v1328_v16 = vpop.permute.xlu1 %493 }
 0x53d   :  { %v499_v17 = vsel %vm308_vm3, %v489_v4, %v1328_v16 }
 0x53e   :  { %965 = vmatpush3.bf16.msra.mxu0 %v499_v17 }
 0x540   :  { %v510_v18 = vpop.permute.xlu0 %509  ;;  %v570_v19 = vpop.permute.xlu1 %569 }
 0x541   :  { %v579_v34 = vsel %vm308_vm3, %v570_v19, %v574_v15 }
 0x544   :  { %v590_v20 = vpop.permute.xlu0 %589  ;;  %v506_v21 = vpop.permute.xlu1 %505 }
 0x545   :  { %v515_v37 = vsel %vm308_vm3, %v506_v21, %v510_v18 }
 0x548   :  { %v526_v22 = vpop.permute.xlu0 %525  ;;  %v586_v23 = vpop.permute.xlu1 %585 }
 0x549   :  { %v595_v42 = vsel %vm308_vm3, %v586_v23, %v590_v20 }
 0x54c   :  { %v606_v24 = vpop.permute.xlu0 %605  ;;  %v522_v25 = vpop.permute.xlu1 %521 }
 0x54d   :  { %v531_v45 = vsel %vm308_vm3, %v522_v25, %v526_v22 }
 0x550   :  { %v542_v26 = vpop.permute.xlu0 %541  ;;  %v602_v27 = vpop.permute.xlu1 %601 }
 0x551   :  { %v611_v51 = vsel %vm308_vm3, %v602_v27, %v606_v24 }
 0x554   :  { %v556_v28 = vpop.permute.xlu0 %555  ;;  %v538_v29 = vpop.permute.xlu1 %537 }
 0x555   :  { %v547_v55 = vsel %vm308_vm3, %v538_v29, %v542_v26 }
 0x558   :  { %v1332_v30 = vpop.permute.xlu0 %495  ;;  %v560_v31 = vpop.permute.xlu1 %559 }
 0x559   :  { %v503_v32 = vsel %vm308_vm3, %v490_v12, %v1332_v30  ;;  %v567_v33 = vsel %vm308_vm3, %v556_v28, %v560_v31 }
 0x55a   :  { %966 = vmatprep.subr.bf16.mxu0 %v567_v33 }
 0x55b   :  { %967 = vmatpush3.bf16.msra.mxu0 %v503_v32 }
 0x55c   :  { %v576_v35 = vpop.permute.xlu0 %575  ;;  %968 = vmatprep.subr.bf16.mxu0 %v579_v34  ;;  %v572_v36 = vpop.permute.xlu1 %571 }
 0x55d   :  { %v583_v38 = vsel %vm308_vm3, %v572_v36, %v576_v35 }
 0x55f   :  { %969 = vmatpush3.bf16.msra.mxu0 %v515_v37 }
 0x560   :  { %v512_v39 = vpop.permute.xlu0 %511  ;;  %970 = vmatprep.subr.bf16.mxu0 %v583_v38  ;;  %v508_v40 = vpop.permute.xlu1 %507 }
 0x561   :  { %v519_v41 = vsel %vm308_vm3, %v508_v40, %v512_v39 }
 0x563   :  { %971 = vmatpush3.bf16.msra.mxu0 %v519_v41 }
 0x564   :  { %v592_v43 = vpop.permute.xlu0 %591  ;;  %972 = vmatprep.subr.bf16.mxu0 %v595_v42  ;;  %v588_v44 = vpop.permute.xlu1 %587 }
 0x565   :  { %v599_v46 = vsel %vm308_vm3, %v588_v44, %v592_v43 }
 0x567   :  { %973 = vmatpush3.bf16.msra.mxu0 %v531_v45 }
 0x568   :  { %v528_v48 = vpop.permute.xlu0 %527  ;;  %974 = vmatprep.subr.bf16.mxu0 %v599_v46  ;;  %v524_v49 = vpop.permute.xlu1 %523 }
 0x569   :  { %v535_v50 = vsel %vm308_vm3, %v524_v49, %v528_v48 }
 0x56b   :  { %975 = vmatpush3.bf16.msra.mxu0 %v535_v50 }
 0x56c   :  { %v608_v52 = vpop.permute.xlu0 %607  ;;  %976 = vmatprep.subr.bf16.mxu0 %v611_v51  ;;  %v604_v53 = vpop.permute.xlu1 %603 }
 0x56d   :  { %v615_v56 = vsel %vm308_vm3, %v604_v53, %v608_v52 }
 0x56f   :  { %977 = vmatpush3.bf16.msra.mxu0 %v547_v55 }
 0x570   :  { %v544_v57 = vpop.permute.xlu0 %543  ;;  %978 = vmatprep.subr.bf16.mxu0 %v615_v56  ;;  %v540_v59 = vpop.permute.xlu1 %539 }
 0x571   :  { %v551_v60 = vsel %vm308_vm3, %v540_v59, %v544_v57 }
 0x573   :  { %979 = vmatpush3.bf16.msra.mxu0 %v551_v60 }
 0x574   :  { %v622_v63 = vpop.permute.xlu0 %621  ;;  %v618_v0 = vpop.permute.xlu1 %617 }
 0x575   :  { %v627_v2 = vsel %vm308_vm3, %v618_v0, %v622_v63 }
 0x576   :  { %721 = vmatmul.mubr.bf16.vlgmr.msra.gmra.mrb[4].mxu0 %v1043_v61  ;;  %998 = vmatprep.subr.bf16.mxu0 %v627_v2 }
 0x577   :  { %999 = vmatpush3.bf16.msra.mxu0 %v627_v2  ;;  %728 = vmatprep.mubr.bf16.mxu0 %v1046_v62 }
 0x578   :  { %v624_v3 = vpop.permute.xlu0 %623  ;;  %v620_v4 = vpop.permute.xlu1 %619 }
 0x579   :  { %v631_v5 = vsel %vm308_vm3, %v620_v4, %v624_v3 }
 0x57a   :  { %1000 = vmatprep.subr.bf16.mxu0 %v631_v5 }
 0x57b   :  { %1001 = vmatpush3.bf16.msra.mxu0 %v631_v5 }
 0x57c   :  { %v636_v47 = vpop.permute.xlu0 %635  ;;  %v634_v8 = vpop.permute.xlu1 %633 }
 0x57d   :  { %v638_v1 = vsel %vm308_vm3, %v1328_v16, %v634_v8  ;;  %v641_v9 = vsel %vm308_vm3, %v1332_v30, %v636_v47  ;;  %v786_v8 = vld [vmem:[%s1448_s8] sm:$0xff] }
 0x57e   :  { %729 = vmatmul.mubr.bf16.gmra.mrb[8].mxu0 %v1048_v6  ;;  %1002 = vmatprep.subr.bf16.mxu0 %v638_v1 }
 0x57f   :  { %1003 = vmatpush3.bf16.msra.mxu0 %v638_v1  ;;  %1006 = vmatprep.mubr.msk.bf16.mxu0 %vm681_vm10, %v1049_v7  ;;  %v787_v1 = vld [vmem:[%s1448_s8 + $0x8] sm:$0xff] }
 0x580   :  { %1004 = vmatprep.subr.bf16.mxu0 %v641_v9 }
 0x583   :  { %1005 = vmatpush3.bf16.msra.mxu0 %v641_v9 }
 0x586   :  { %1007 = vmatmul.mubr.msk.bf16.vlgmr.msra.gmra.mrb[12].mxu0 %vm681_vm10, %v1050_v10 }
 0x649   :  { %v980_v11 = vpop.f32.mrb[4].mxu0 }
 0x64a   :  { %v981_v12 = vpop.f32.mrb[5].mxu0 }
 0x64b   :  { %v982_v54 = vadd.f32 %v981_v12, %v980_v11  ;;  %v983_v58 = vpop.f32.mrb[6].mxu0  ;;  %v788_v12 = vld [vmem:[%s1448_s8 + $0x10] sm:$0xff] }
 0x64c   :  { %v984_v13 = vpop.f32.mrb[7].mxu0 }
 0x64d   :  { %v985_v14 = vadd.f32 %v984_v13, %v983_v58  ;;  %v789_v58 = vld [vmem:[%s1448_s8 + $0x18] sm:$0xff] }
 0x651   :  { %v986_v15 = vpop.f32.mrb[8].mxu0 }
 0x652   :  { %v987_v16 = vpop.f32.mrb[9].mxu0 }
 0x653   :  { %v988_v17 = vadd.f32 %v987_v16, %v986_v15  ;;  %v989_v18 = vpop.f32.mrb[10].mxu0 }
 0x654   :  { %v990_v19 = vpop.f32.mrb[11].mxu0 }
 0x655   :  { %v991_v20 = vadd.f32 %v990_v19, %v989_v18  ;;  %v791_v18 = vld [vmem:[%s1449_s9 + $0x8] sm:$0xff] }
 0x659   :  { %v1008_v21 = vpop.f32.mrb[12].mxu0 }
 0x65a   :  { %v1372_v22 = vadd.f32 %v1008_v21, %v988_v17  ;;  %v771_v23 = vpop.f32.mrb[13].mxu0  ;;  %v790_v21 = vld [vmem:[%s1449_s9] sm:$0xff] }
 0x65b   :  { %v1374_v24 = vadd.f32 %v982_v54, %v771_v23  ;;  %v1009_v25 = vpop.f32.mrb[14].mxu0 }
 0x65c   :  { %v1376_v26 = vadd.f32 %v1009_v25, %v991_v20  ;;  %v774_v27 = vpop.f32.mrb[15].mxu0  ;;  %v800_v28 = vsel %vm681_vm10, %v1372_v22, 0.0  ;;  %v812_v36 = vmul.f32 %v1372_v22, %v1372_v22  ;;  %v793_v25 = vld [vmem:[%s1449_s9 + $0x18] sm:$0xff] }
 0x65d   :  { %v1380_v29 = vadd.f32 %v985_v14, %v774_v27  ;;  %801 = vadd.xlane.f32.xlu0 %v800_v28  ;;  %v794_v30 = vsel %vm681_vm10, %v1374_v24, 0.0  ;;  %v810_v32 = vmul.f32 %v1374_v24, %v1374_v24 }
 0x65e   :  { %795 = vadd.xlane.f32.xlu1 %v794_v30  ;;  %v803_v33 = vsel %vm681_vm10, %v1376_v26, 0.0  ;;  %v813_v38 = vmul.f32 %v1376_v26, %v1376_v26  ;;  %v820_v39 = vsel %vm681_vm10, %v812_v36, 0.0 }
 0x65f   :  { %v797_v31 = vsel %vm681_vm10, %v1380_v29, 0.0  ;;  %v811_v34 = vmul.f32 %v1380_v29, %v1380_v29  ;;  %v814_v35 = vsel %vm681_vm10, %v810_v32, 0.0 }
 0x660   :  { %v823_v40 = vsel %vm681_vm10, %v813_v38, 0.0 }
 0x661   :  { %798 = vadd.xlane.f32.xlu0 %v797_v31  ;;  %v817_v37 = vsel %vm681_vm10, %v811_v34, 0.0  ;;  %v792_v31 = vld [vmem:[%s1449_s9 + $0x10] sm:$0xff] }
 0x662   :  { %804 = vadd.xlane.f32.xlu1 %v803_v33 }
 0x665   :  { %815 = vadd.xlane.f32.xlu0 %v814_v35 }
 0x666   :  { %818 = vadd.xlane.f32.xlu1 %v817_v37 }
 0x669   :  { %821 = vadd.xlane.f32.xlu0 %v820_v39 }
 0x66a   :  { %824 = vadd.xlane.f32.xlu1 %v823_v40 }
 0x6ea   :  { %v802_v41 = vpop.xlane.xlu0 %801 }
 0x6eb   :  { %v796_v42 = vpop.xlane.xlu1 %795  ;;  %v808_v49 = vmul.f32 0.015625, %v802_v41 }
 0x6ec   :  { %v806_v44 = vmul.f32 0.015625, %v796_v42 }
 0x6ed   :  { %v832_v61 = vmul.f32 %v808_v49, %v808_v49 }
 0x6ee   :  { %v799_v43 = vpop.xlane.xlu0 %798  ;;  %v830_v50 = vmul.f32 %v806_v44, %v806_v44 }
 0x6ef   :  { %v805_v45 = vpop.xlane.xlu1 %804  ;;  %v807_v46 = vmul.f32 0.015625, %v799_v43 }
 0x6f0   :  { %v809_v55 = vmul.f32 0.015625, %v805_v45 }
 0x6f1   :  { %v831_v53 = vmul.f32 %v807_v46, %v807_v46 }
 0x6f2   :  { %v816_v48 = vpop.xlane.xlu0 %815  ;;  %v833_v2 = vmul.f32 %v809_v55, %v809_v55 }
 0x6f3   :  { %v826_v51 = vmul.f32 0.015625, %v816_v48  ;;  %v819_v52 = vpop.xlane.xlu1 %818 }
 0x6f4   :  { %v827_v56 = vmul.f32 0.015625, %v819_v52 }
 0x6f5   :  { %v834_v57 = vsub.f32 %v826_v51, %v830_v50 }
 0x6f6   :  { %v835_v59 = vsub.f32 %v827_v56, %v831_v53  ;;  %v822_v60 = vpop.xlane.xlu0 %821 }
 0x6f7   :  { %v838_v62 = vadd.f32 1e-05, %v834_v57  ;;  %v828_v63 = vmul.f32 0.015625, %v822_v60  ;;  %v825_v0 = vpop.xlane.xlu1 %824 }
 0x6f8   :  { %v839_v3 = vadd.f32 1e-05, %v835_v59  ;;  %v829_v4 = vmul.f32 0.015625, %v825_v0 }
 0x6f9   :  { %1063 = vrsqrt.f32 %v838_v62  ;;  %v836_v5 = vsub.f32 %v828_v63, %v832_v61 }
 0x6fa   :  { %1065 = vrsqrt.f32 %v839_v3  ;;  %v837_v6 = vsub.f32 %v829_v4, %v833_v2 }
 0x6fb   :  { %v840_v7 = vadd.f32 1e-05, %v836_v5 }
 0x6fc   :  { %v841_v47 = vadd.f32 1e-05, %v837_v6 }
 0x6fd   :  { %1067 = vrsqrt.f32 %v840_v7 }
 0x6fe   :  { %1069 = vrsqrt.f32 %v841_v47 }
 0x703   :  { %v1064_v9 = vpop.eup %1063 }
 0x704   :  { %v1066_v10 = vpop.eup %1065  ;;  %v846_v11 = vmul.f32 %v1064_v9, %v786_v8 }
 0x705   :  { %v847_v54 = vmul.f32 %v1066_v10, %v787_v1 }
 0x706   :  { %860 = vperm.xlu0 %1029, %v846_v11   ;;  %v850_v19 = vmul.f32 %v846_v11, %v806_v44 }
 0x707   :  { %v1068_v13 = vpop.eup %1067  ;;  %v851_v17 = vmul.f32 %v847_v54, %v807_v46 }
 0x708   :  { %v1070_v14 = vpop.eup %1069  ;;  %v848_v15 = vmul.f32 %v1068_v13, %v788_v12  ;;  %v854_v28 = vsub.f32 %v790_v21, %v850_v19 }
 0x709   :  { %v849_v16 = vmul.f32 %v1070_v14, %v789_v58  ;;  %v855_v20 = vsub.f32 %v791_v18, %v851_v17 }
 0x70a   :  { %870 = vperm.xlu1 %1030, %v848_v15   ;;  %v852_v27 = vmul.f32 %v848_v15, %v808_v49 }
 0x70b   :  { %875 = vperm.xlu0 %1029, %v849_v16   ;;  %v853_v23 = vmul.f32 %v849_v16, %v809_v55 }
 0x70c   :  { %v856_v32 = vsub.f32 %v792_v31, %v852_v27 }
 0x70d   :  { %v857_v30 = vsub.f32 %v793_v25, %v853_v23 }
 0x70e   :  { %865 = vperm.xlu1 %1030, %v847_v54  }
 0x70f   :  { %889 = vperm.xlu0 %1029, %v855_v20  }
 0x712   :  { %884 = vperm.xlu1 %1030, %v854_v28  }
 0x713   :  { %899 = vperm.xlu0 %1029, %v857_v30  }
 0x716   :  { %894 = vperm.xlu1 %1030, %v856_v32  }
 0x785   :  { %v861_v33 = vpop.permute.xlu0 %860 }
 0x786   :  { %v878_v39 = vmul.f32 %v861_v33, %v1374_v24 }
 0x789   :  { %v871_v34 = vpop.permute.xlu1 %870 }
 0x78a   :  { %v876_v35 = vpop.permute.xlu0 %875  ;;  %v880_v48 = vmul.f32 %v871_v34, %v1372_v22 }
 0x78b   :  { %v881_v41 = vmul.f32 %v876_v35, %v1376_v26 }
 0x78d   :  { %v866_v36 = vpop.permute.xlu1 %865 }
 0x78e   :  { %v879_v37 = vmul.f32 %v866_v36, %v1380_v29  ;;  %v890_v38 = vpop.permute.xlu0 %889 }
 0x790   :  { %v903_v40 = vadd.f32 %v890_v38, %v879_v37 }
 0x791   :  { %v885_v42 = vpop.permute.xlu1 %884 }
 0x792   :  { %v907_v43 = vmax.f32 %v903_v40, 0.0  ;;  %v902_v44 = vadd.f32 %v885_v42, %v878_v39  ;;  %v900_v45 = vpop.permute.xlu0 %899 }
 0x793   :  { %v905_v46 = vadd.f32 %v900_v45, %v881_v41 }
 0x794   :  { %v961_v49 = vpack.c.bf16 %v907_v43, %v907_v43  ;;  %v906_v50 = vmax.f32 %v902_v44, 0.0 }
 0x795   :  { %v909_v51 = vmax.f32 %v905_v46, 0.0  ;;  %v895_v52 = vpop.permute.xlu1 %894 }
 0x796   :  { %928 = vst.msk [vmem:[%s1450_s10 + $0x4] sm:$0xf] %vm926_vm11, %v961_v49  ;;  %v960_v24 = vpack.c.bf16 %v906_v50, %v906_v50  ;;  %v904_v29 = vadd.f32 %v895_v52, %v880_v48 }
 0x797   :  { %v963_v53 = vpack.c.bf16 %v909_v51, %v909_v51 }
 0x798   :  { %927 = vst.msk [vmem:[%s1450_s10] sm:$0xf] %vm926_vm11, %v960_v24  ;;  %v908_v26 = vmax.f32 %v904_v29, 0.0 }
 0x799   :  { %930 = vst.msk [vmem:[%s1450_s10 + $0xc] sm:$0xf] %vm926_vm11, %v963_v53 }
 0x79a   :  { %v962_v22 = vpack.c.bf16 %v908_v26, %v908_v26 }
 0x79c   :  { %929 = vst.msk [vmem:[%s1450_s10 + $0x8] sm:$0xf] %vm926_vm11, %v962_v22 }

// kernel: convnet_forward.3
= control target key start
LH: loop header
LB: loop body
LE: loop exit
PB: predicated region body
PF: predicated region fallthrough
CT: control target
= control target key end

     0   :  { %v163_v28 = vlaneseq  ;;  %v1135_v36 = vmov 1966171168   ;;  %s1407_s0 = inlined_call_operand.vmem [shape: bf16[2,1024], index: 0, kind: input, shape index: {}]   ;;  %s1408_s1 = inlined_call_operand.vmem [shape: bf16[1024,40], index: 1, kind: input, shape index: {}]   ;;  %s1409_s2 = inlined_call_operand.vmem [shape: f32[1,40], index: 2, kind: input, shape index: {}]   ;;  %s1410_s3 = inlined_call_operand.vmem [shape: bf16[40,81], index: 3, kind: input, shape index: {}]   ;;  %s1411_s4 = inlined_call_operand.vmem [shape: f32[1,81], index: 4, kind: input, shape index: {}]   ;;  %s1412_s5 = inlined_call_operand.hbm [shape: f32[2,81], index: 5, kind: output, shape index: {}]  }
   0x1   :  { %v1039_v0 = vld [vmem:[%s1408_s1 + $0x40] sm:$0xff]   ;;  %v1043_v4 = vld [vmem:[%s1408_s1 + $0x48] sm:$0xff]   ;;  %v1047_v8 = vld [vmem:[%s1408_s1 + $0x50] sm:$0xff]   ;;  %v161_v37 = vunpack.c.l.s4 %v1135_v36 }
   0x2   :  { %v1040_v1 = vld [vmem:[%s1408_s1 + $0xc0] sm:$0xff]   ;;  %933 = vmatprep.subr.bf16.mxu0 %v1039_v0  ;;  %v1044_v5 = vld [vmem:[%s1408_s1 + $0xc8] sm:$0xff]   ;;  %v1048_v9 = vld [vmem:[%s1408_s1 + $0xd0] sm:$0xff]   ;;  %v164_v33 = vshrl.u32 %v163_v28, 7 }
   0x3   :  { %v1041_v2 = vld [vmem:[%s1408_s1] sm:$0xff]   ;;  %955 = vmatprep.subr.bf16.mxu1 %v1040_v1  ;;  %v1045_v6 = vld [vmem:[%s1408_s1 + $0x8] sm:$0xff]   ;;  %v1049_v10 = vld [vmem:[%s1408_s1 + $0x10] sm:$0xff]   ;;  %v162_v40 = vunpack.c.0.s8 %v161_v37 }
   0x4   :  { %v1042_v3 = vld [vmem:[%s1408_s1 + $0x80] sm:$0xff]   ;;  %934 = vmatpush3.bf16.msra.mxu0 %v1041_v2  ;;  %v1046_v7 = vld [vmem:[%s1408_s1 + $0x88] sm:$0xff]   ;;  %v1050_v11 = vld [vmem:[%s1408_s1 + $0x90] sm:$0xff]  }
   0x5   :  { %956 = vmatpush3.bf16.msra.mxu1 %v1042_v3  ;;  %935 = vmatprep.subr.bf16.mxu0 %v1043_v4  ;;  %v1051_v12 = vld [vmem:[%s1408_s1 + $0x58] sm:$0xff]   ;;  %v1055_v16 = vld [vmem:[%s1408_s1 + $0x60] sm:$0xff]   ;;  %v1059_v20 = vld [vmem:[%s1408_s1 + $0x68] sm:$0xff]   ;;  %v1274_v41 = vsub.s32 %v162_v40, %v164_v33 }
   0x6   :  { %957 = vmatprep.subr.bf16.mxu1 %v1044_v5  ;;  %v1052_v13 = vld [vmem:[%s1408_s1 + $0xd8] sm:$0xff]   ;;  %v1056_v17 = vld [vmem:[%s1408_s1 + $0xe0] sm:$0xff]   ;;  %v1060_v21 = vld [vmem:[%s1408_s1 + $0xe8] sm:$0xff]  }
   0x7   :  { %v1053_v14 = vld [vmem:[%s1408_s1 + $0x18] sm:$0xff]   ;;  %v1057_v18 = vld [vmem:[%s1408_s1 + $0x20] sm:$0xff]   ;;  %v1061_v22 = vld [vmem:[%s1408_s1 + $0x28] sm:$0xff]  }
   0x8   :  { %936 = vmatpush3.bf16.msra.mxu0 %v1045_v6  ;;  %v1054_v15 = vld [vmem:[%s1408_s1 + $0x98] sm:$0xff]   ;;  %v1058_v19 = vld [vmem:[%s1408_s1 + $0xa0] sm:$0xff]   ;;  %v1062_v23 = vld [vmem:[%s1408_s1 + $0xa8] sm:$0xff]  }
   0x9   :  { %958 = vmatpush3.bf16.msra.mxu1 %v1046_v7  ;;  %937 = vmatprep.subr.bf16.mxu0 %v1047_v8  ;;  %v1063_v24 = vld [vmem:[%s1408_s1 + $0x70] sm:$0xff]   ;;  %v1067_v29 = vld [vmem:[%s1408_s1 + $0x78] sm:$0xff]   ;;  %v22_v34 = vld [vmem:[%s1407_s0] sm:$0xff] }
   0xa   :  { %959 = vmatprep.subr.bf16.mxu1 %v1048_v9  ;;  %v1064_v25 = vld [vmem:[%s1408_s1 + $0xf0] sm:$0xff]   ;;  %v1068_v30 = vld [vmem:[%s1408_s1 + $0xf8] sm:$0xff]   ;;  %v1072_v35 = vld [vmem:[%s1408_s1 + $0x140] sm:$0xff]   ;;  %v159_v39 = vcombine.high %v22_v34, %v22_v34  ;;  %v166_v42 = vrot.slane %v22_v34, %v1274_v41 }
   0xb   :  { %v1065_v26 = vld [vmem:[%s1408_s1 + $0x30] sm:$0xff]   ;;  %v1069_v31 = vld [vmem:[%s1408_s1 + $0x38] sm:$0xff]   ;;  %v1073_v38 = vld [vmem:[%s1408_s1 + $0x1c0] sm:$0xff]  }
   0xc   :  { %938 = vmatpush3.bf16.msra.mxu0 %v1049_v10  ;;  %v1066_v27 = vld [vmem:[%s1408_s1 + $0xb0] sm:$0xff]   ;;  %v1070_v32 = vld [vmem:[%s1408_s1 + $0xb8] sm:$0xff]   ;;  %v1278_v43 = vrot.slane %v159_v39, %v1274_v41  ;;  %v174_v44 = vcombine.high %v166_v42, %v166_v42  ;;  %v182_v45 = vrot.slane %v166_v42, %v1274_v41  ;;  %v1074_v47 = vld [vmem:[%s1408_s1 + $0x100] sm:$0xff]  }
   0xd   :  { %960 = vmatpush3.bf16.msra.mxu1 %v1050_v11  ;;  %939 = vmatprep.subr.bf16.mxu0 %v1051_v12  ;;  %v1075_v49 = vld [vmem:[%s1408_s1 + $0x180] sm:$0xff]   ;;  %v1076_v52 = vld [vmem:[%s1408_s1 + $0x148] sm:$0xff]   ;;  %v1080_v58 = vld [vmem:[%s1408_s1 + $0x150] sm:$0xff]  }
   0xe   :  { %961 = vmatprep.subr.bf16.mxu1 %v1052_v13  ;;  %v175_v46 = vcombine.high %v1278_v43, %v1278_v43  ;;  %v196_v48 = vrot.slane %v174_v44, %v1274_v41  ;;  %v204_v51 = vcombine.high %v182_v45, %v182_v45  ;;  %v1077_v54 = vld [vmem:[%s1408_s1 + $0x1c8] sm:$0xff]   ;;  %v1081_v59 = vld [vmem:[%s1408_s1 + $0x1d0] sm:$0xff]   ;;  %v1084_v62 = vld [vmem:[%s1408_s1 + $0x158] sm:$0xff]  }
   0xf   :  { %v1078_v55 = vld [vmem:[%s1408_s1 + $0x108] sm:$0xff]   ;;  %v1082_v60 = vld [vmem:[%s1408_s1 + $0x110] sm:$0xff]   ;;  %v1085_v63 = vld [vmem:[%s1408_s1 + $0x1d8] sm:$0xff]  }
  0x10   :  { %940 = vmatpush3.bf16.msra.mxu0 %v1053_v14  ;;  %v203_v50 = vrot.slane %v175_v46, %v1274_v41  ;;  %632 = vmatprep.mubr.bf16.mxu0 %v196_v48  ;;  %v206_v53 = vcombine.high %v196_v48, %v196_v48  ;;  %v1079_v57 = vld [vmem:[%s1408_s1 + $0x188] sm:$0xff]   ;;  %v1083_v61 = vld [vmem:[%s1408_s1 + $0x190] sm:$0xff]   ;;  %v1086_v0 = vld [vmem:[%s1408_s1 + $0x118] sm:$0xff]  }
  0x11   :  { %962 = vmatpush3.bf16.msra.mxu1 %v1054_v15  ;;  %941 = vmatprep.subr.bf16.mxu0 %v1055_v16  ;;  %v1087_v1 = vld [vmem:[%s1408_s1 + $0x198] sm:$0xff]   ;;  %v1088_v2 = vld [vmem:[%s1408_s1 + $0x160] sm:$0xff]   ;;  %v1092_v6 = vld [vmem:[%s1408_s1 + $0x168] sm:$0xff]  }
  0x12   :  { %963 = vmatprep.subr.bf16.mxu1 %v1056_v17  ;;  %v207_v56 = vcombine.high %v203_v50, %v203_v50  ;;  %672 = vmatprep.mubr.bf16.mxu1 %v206_v53  ;;  %v1089_v3 = vld [vmem:[%s1408_s1 + $0x1e0] sm:$0xff]   ;;  %v1093_v7 = vld [vmem:[%s1408_s1 + $0x1e8] sm:$0xff]   ;;  %v1096_v10 = vld [vmem:[%s1408_s1 + $0x170] sm:$0xff]  }
  0x13   :  { %v1090_v4 = vld [vmem:[%s1408_s1 + $0x120] sm:$0xff]   ;;  %v1094_v8 = vld [vmem:[%s1408_s1 + $0x128] sm:$0xff]   ;;  %v1097_v11 = vld [vmem:[%s1408_s1 + $0x1f0] sm:$0xff]  }
  0x14   :  { %942 = vmatpush3.bf16.msra.mxu0 %v1057_v18  ;;  %v1091_v5 = vld [vmem:[%s1408_s1 + $0x1a0] sm:$0xff]   ;;  %v1095_v9 = vld [vmem:[%s1408_s1 + $0x1a8] sm:$0xff]  }
  0x15   :  { %964 = vmatpush3.bf16.msra.mxu1 %v1058_v19  ;;  %943 = vmatprep.subr.bf16.mxu0 %v1059_v20 }
  0x16   :  { %965 = vmatprep.subr.bf16.mxu1 %v1060_v21 }
  0x18   :  { %944 = vmatpush3.bf16.msra.mxu0 %v1061_v22 }
  0x19   :  { %966 = vmatpush3.bf16.msra.mxu1 %v1062_v23  ;;  %945 = vmatprep.subr.bf16.mxu0 %v1063_v24 }
  0x1a   :  { %967 = vmatprep.subr.bf16.mxu1 %v1064_v25 }
  0x1c   :  { %946 = vmatpush3.bf16.msra.mxu0 %v1065_v26 }
  0x1d   :  { %968 = vmatpush3.bf16.msra.mxu1 %v1066_v27  ;;  %947 = vmatprep.subr.bf16.mxu0 %v1067_v29 }
  0x1e   :  { %969 = vmatprep.subr.bf16.mxu1 %v1068_v30 }
  0x20   :  { %948 = vmatpush3.bf16.msra.mxu0 %v1069_v31 }
  0x21   :  { %970 = vmatpush3.bf16.msra.mxu1 %v1070_v32  ;;  %977 = vmatprep.subr.bf16.mxu0 %v1072_v35 }
  0x22   :  { %999 = vmatprep.subr.bf16.mxu1 %v1073_v38 }
  0x23   :  { %633 = vmatmul.mubr.bf16.vlgmr.msra.gmra.mrb[0].mxu0 %v182_v45 }
  0x24   :  { %978 = vmatpush3.bf16.msra.mxu0 %v1074_v47  ;;  %673 = vmatmul.mubr.bf16.vlgmr.msra.gmra.mrb[0].mxu1 %v204_v51 }
  0x25   :  { %979 = vmatprep.subr.bf16.mxu0 %v1076_v52  ;;  %1000 = vmatpush3.bf16.msra.mxu1 %v1075_v49 }
  0x26   :  { %712 = vmatprep.mubr.bf16.mxu0 %v203_v50  ;;  %1001 = vmatprep.subr.bf16.mxu1 %v1077_v54 }
  0x27   :  { %752 = vmatprep.mubr.bf16.mxu1 %v207_v56 }
  0x28   :  { %980 = vmatpush3.bf16.msra.mxu0 %v1078_v55 }
  0x29   :  { %981 = vmatprep.subr.bf16.mxu0 %v1080_v58  ;;  %1002 = vmatpush3.bf16.msra.mxu1 %v1079_v57 }
  0x2a   :  { %1003 = vmatprep.subr.bf16.mxu1 %v1081_v59 }
  0x2c   :  { %982 = vmatpush3.bf16.msra.mxu0 %v1082_v60 }
  0x2d   :  { %983 = vmatprep.subr.bf16.mxu0 %v1084_v62  ;;  %1004 = vmatpush3.bf16.msra.mxu1 %v1083_v61 }
  0x2e   :  { %1005 = vmatprep.subr.bf16.mxu1 %v1085_v63 }
  0x30   :  { %984 = vmatpush3.bf16.msra.mxu0 %v1086_v0 }
  0x31   :  { %985 = vmatprep.subr.bf16.mxu0 %v1088_v2  ;;  %1006 = vmatpush3.bf16.msra.mxu1 %v1087_v1 }
  0x32   :  { %1007 = vmatprep.subr.bf16.mxu1 %v1089_v3 }
  0x34   :  { %986 = vmatpush3.bf16.msra.mxu0 %v1090_v4 }
  0x35   :  { %987 = vmatprep.subr.bf16.mxu0 %v1092_v6  ;;  %1008 = vmatpush3.bf16.msra.mxu1 %v1091_v5 }
  0x36   :  { %1009 = vmatprep.subr.bf16.mxu1 %v1093_v7 }
  0x37   :  { %10 = vsyncpa [#allocation3], 0  ;;  %v1098_v12 = vld [vmem:[%s1408_s1 + $0x130] sm:$0xff]   ;;  %v1100_v13 = vld [vmem:[%s1408_s1 + $0x178] sm:$0xff]   ;;  %v189_v17 = vrot.slane %v1278_v43, %v1274_v41  ;;  %v1136_v21 = vmov 0.0   ;;  %vm792_vm0 = vcmask 1043456  }
  0x38   :  { %988 = vmatpush3.bf16.msra.mxu0 %v1094_v8  ;;  %v1099_v14 = vld [vmem:[%s1408_s1 + $0x1b0] sm:$0xff]   ;;  %v1101_v15 = vld [vmem:[%s1408_s1 + $0x1f8] sm:$0xff]   ;;  %v1104_v20 = vld [vmem:[%s1410_s3] sm:$0xff]   ;;  %vm1137_vm1 = vmmov 0   ;;  %vm788_vm2 = vcmask 326656   ;;  %vm836_vm3 = vcmask 656384  }
  0x39   :  { %989 = vmatprep.subr.bf16.mxu0 %v1096_v10  ;;  %1010 = vmatpush3.bf16.msra.mxu1 %v1095_v9  ;;  %v1102_v16 = vld [vmem:[%s1408_s1 + $0x138] sm:$0xff]   ;;  %v205_v19 = vcombine.high %v189_v17, %v189_v17  ;;  %v1105_v22 = vld [vmem:[%s1410_s3 + $0x8] sm:$0xff]   ;;  %v1106_v23 = vld [vmem:[%s1410_s3 + $0x10] ss:$0 sps:$4 sm:$0xff]  }
  0x3a   :  { %1011 = vmatprep.subr.bf16.mxu1 %v1097_v11  ;;  %v1103_v18 = vld [vmem:[%s1408_s1 + $0x1b8] sm:$0xff]   ;;  %v794_v24 = vsel %vm792_vm0, %v1106_v23, 0  ;;  %v863_v26 = vld [vmem:[%s1409_s2] ss:$0 sm:$0xff] }
  0x3b   :  { %v928_v51 = vld [vmem:[%s1411_s4] ss:$0 sm:$0xff]  ;;  %s1138_s4 = smov [#allocation2]  }
  0x3c   :  { %990 = vmatpush3.bf16.msra.mxu0 %v1098_v12  ;;  %s855_s27 = sshll.u32 %s1138_s4, 4  ;;  %s856_s27 = int_to_ptr.vmem [resolvable:$true] %s855_s27 }
  0x3d   :  { %991 = vmatprep.subr.bf16.mxu0 %v1100_v13  ;;  %1012 = vmatpush3.bf16.msra.mxu1 %v1099_v14  ;;  %s1111_s28 = scalar_lea.vmem %s856_s27, 32  ;;  %p1116_p1 = scmp.lt.s32.totalorder %s856_s27, %s856_s27 }
  0x3e   :  { %1013 = vmatprep.subr.bf16.mxu1 %v1101_v15  ;;  %p1112_p0 = scmp.ne.s32.totalorder %s856_s27, %s1111_s28  ;;  %p1117_p2 = scmp.lt.s32.totalorder %s1111_s28, %s1111_s28 }
  0x40   :  { %992 = vmatpush3.bf16.msra.mxu0 %v1102_v16  ;;  %p1118_p3 = por %p1117_p2, %p1116_p1 }
  0x41   :  { %1014 = vmatpush3.bf16.msra.mxu1 %v1103_v18  ;;  %1025 = vmatprep.subr.bf16.mxu0 %v1136_v21 }
  0x42   :  { %p1119_p4 = pnand %p1118_p3, %p1112_p0 }
  0x43   :  { %713 = vmatmul.mubr.bf16.vlgmr.msra.gmra.mrb[4].mxu0 %v189_v17 }
  0x44   :  { %753 = vmatmul.mubr.bf16.vlgmr.msra.gmra.mrb[4].mxu1 %v205_v19  ;;  %1026 = vmatpush3.bf16.msra.mxu0 %v1104_v20 }
  0x45   :  { %1027 = vmatprep.subr.bf16.mxu0 %v1136_v21  ;;  %1031 = vmatprep.mubr.msk.bf16.mxu0 %vm1137_vm1, %v1136_v21 }
  0x48   :  { %1028 = vmatpush3.bf16.msra.mxu0 %v1105_v22 }
  0x49   :  { %1029 = vmatprep.subr.bf16.mxu0 %v1136_v21 }
  0x4c   :  { %1030 = vmatpush3.bf16.msra.mxu0 %v794_v24 }
  0xf6   :  { %v949_v25 = vpop.f32.mrb[0].mxu0 }
  0xf7   :  { %v950_v27 = vpop.f32.mrb[1].mxu0  ;;  %v971_v28 = vpop.f32.mrb[0].mxu1 }
  0xf8   :  { %v951_v29 = vadd.f32 %v950_v27, %v949_v25  ;;  %v952_v30 = vpop.f32.mrb[2].mxu0  ;;  %v972_v31 = vpop.f32.mrb[1].mxu1 }
  0xf9   :  { %v953_v32 = vpop.f32.mrb[3].mxu0  ;;  %v973_v34 = vadd.f32 %v972_v31, %v971_v28  ;;  %v974_v35 = vpop.f32.mrb[2].mxu1 }
  0xfa   :  { %v635_v33 = vadd.f32 %v951_v29, %v863_v26  ;;  %v975_v36 = vpop.f32.mrb[3].mxu1 }
  0xfc   :  { %v675_v37 = vadd.f32 %v973_v34, %v635_v33 }
 0x116   :  { %v993_v38 = vpop.f32.mrb[4].mxu0 }
 0x117   :  { %v994_v39 = vpop.f32.mrb[5].mxu0  ;;  %v1015_v40 = vpop.f32.mrb[4].mxu1 }
 0x118   :  { %v995_v41 = vadd.f32 %v994_v39, %v993_v38  ;;  %v996_v42 = vpop.f32.mrb[6].mxu0  ;;  %v1016_v43 = vpop.f32.mrb[5].mxu1 }
 0x119   :  { %v997_v44 = vpop.f32.mrb[7].mxu0  ;;  %v1017_v46 = vadd.f32 %v1016_v43, %v1015_v40  ;;  %v1018_v47 = vpop.f32.mrb[6].mxu1 }
 0x11a   :  { %v715_v45 = vadd.f32 %v995_v41, %v675_v37  ;;  %v1019_v48 = vpop.f32.mrb[7].mxu1 }
 0x11c   :  { %v755_v49 = vadd.f32 %v1017_v46, %v715_v45 }
 0x11e   :  { %v760_v50 = vpack.c.bf16 %v755_v49, %v755_v49 }
 0x120   :  { %1032 = vmatmul.mubr.msk.bf16.vlgmr.msra.gmra.mrb[8].mxu0 %vm788_vm2, %v760_v50 }
 0x1f3   :  { %v830_v52 = vpop.f32.mrb[8].mxu0 }
 0x1f4   :  { %v831_v53 = vadd.f32 %v928_v51, %v830_v52  ;;  %v1033_v54 = vpop.f32.mrb[9].mxu0 }
 0x1f5   :  { %v833_v55 = vpop.f32.mrb[10].mxu0 }
 0x1f6   :  { %v1034_v56 = vpop.f32.mrb[11].mxu0  ;;  %v837_v57 = vsel %vm836_vm3, %v831_v53, -inf }
 0x1f7   :  { %838 = vmax.xlane.f32.xlu0 %v837_v57 }
 0x284   :  { %v839_v58 = vpop.xlane.xlu0 %838 }
 0x285   :  { %v840_v59 = vsub.f32 %v831_v53, %v839_v58 }
 0x287   :  { %v841_v60 = vmul.f32 1.442695, %v840_v59 }
 0x289   :  { %1107 = vpow2.f32 %v841_v60 }
 0x293   :  { %v1108_v61 = vpop.eup %1107 }
 0x294   :  { %v843_v62 = vsel %vm836_vm3, %v1108_v61, 0.0 }
 0x295   :  { %844 = vadd.xlane.f32.xlu0 %v843_v62 }
 0x322   :  { %v845_v63 = vpop.xlane.xlu0 %844 }
 0x323   :  { %1109 = vrcp.f32 %v845_v63 }
 0x32d   :  { %v1110_v0 = vpop.eup %1109 }
 0x32e   :  { %v847_v1 = vmul.f32 %v1110_v0, %v1108_v61 }
 0x330   :  { %848 = vst.msk [vmem:[#allocation2] sm:$0x3] %vm836_vm3, %v847_v1 }
 0x331   :  { %1122 = shalt.err (!%p1119_p4)
}
 0x332   :  { %s1123_s6 = scalar_lea.hbm %s1412_s5, 32 }
 0x333   :  { %p1124_p5 = scmp.ne.s32.totalorder %s1412_s5, %s1123_s6  ;;  %p1127_p6 = scmp.lt.u32.totalorder %s1123_s6, %s1412_s5 }
 0x335   :  { %p1129_p7 = pnand %p1127_p6, %p1124_p5 }
 0x337   :  { %1132 = shalt.err (!%p1129_p7)
}
 0x338   :  { %858 = dma.vmem_to_hbm [thread:$0]  %s856_s27, 32, %s1412_s5, [#allocation3]  }
 0x339   :  { %1133 = dma.done.wait [#allocation3], 32  }
 0x33a   :  { %1134 = vsyncadd [#allocation3], 4294967264 }
 0x33b   :  { %862 = vsyncpa [#allocation3], 1 }

</bundles_post_ra>
